<compile_context>
chip_gen: v7x
topology: tpu7x:2x2x1
jax: 0.10.0
libtpu: 0.0.40
codegen_flags: <defaults>
</compile_context>

<pallas_src>
import jax
import jax.numpy as jnp
from jax import lax
from jax.experimental import pallas as pl
from jax.experimental.pallas import tpu as pltpu


# ---------------------------------------------------------------------------
# Pallas kernel: 2-layer bidirectional LSTM + output projection, all in VMEM.
# ---------------------------------------------------------------------------
def make_decoder_kernel(T, B, H):
    G = 4 * H  # gate width per direction

    def kernel(x_ref, wih0_ref, wih1_ref, whh_ref, b0_ref, b1_ref,
               fcw_ref, fcb_ref, out_ref):
        f32 = jnp.float32
        x = x_ref[...]                                   # (T*B, E) time-major

        def run_bidir(gin_both, whh_f, whh_b):
            # gin_both: (T*B, 2G); fwd gates in [:, :G], bwd gates in [:, G:].
            gin_f = gin_both[:, :G]                      # vreg-aligned lane slice
            gin_b = gin_both[:, G:]
            zero = jnp.zeros((B, H), f32)
            h_f, h_b = zero, zero
            c = jnp.zeros((2 * B, H), f32)               # stacked [c_fwd; c_bwd]
            hs_f = [None] * T
            hs_b = [None] * T
            # Fully unrolled static time loop; fwd and bwd chains advance in the
            # same step so the scheduler overlaps the two serial recurrences.
            for s in range(T):
                tf, tb = s, T - 1 - s
                # Precomputed gate inputs for this step, stacked on sublanes.
                # (This concat has no dependence on h/c -> off the serial path.)
                gin_t = jnp.concatenate(
                    [gin_f[tf * B:(tf + 1) * B, :],
                     gin_b[tb * B:(tb + 1) * B, :]], axis=0)     # (2B, 4H)
                # Recurrent matmuls (MXU) for both chains, then stack.
                hdot = jnp.concatenate(
                    [jnp.dot(h_f, whh_f, preferred_element_type=f32),
                     jnp.dot(h_b, whh_b, preferred_element_type=f32)], axis=0)
                gates = gin_t + hdot                              # (2B, 4H)
                # Whole-vreg transcendentals; slice gate ranges afterwards.
                sg = jax.nn.sigmoid(gates)
                tg = jnp.tanh(gates)
                i_g = sg[:, 0 * H:1 * H]
                f_g = sg[:, 1 * H:2 * H]
                g_g = tg[:, 2 * H:3 * H]
                o_g = sg[:, 3 * H:4 * H]
                c = f_g * c + i_g * g_g                           # (2B, H)
                h = o_g * jnp.tanh(c)                             # (2B, H)
                h_f = h[:B]
                h_b = h[B:]
                hs_f[tf] = h_f
                hs_b[tb] = h_b
            return (jnp.concatenate(hs_f, axis=0),       # (T*B, H) forward
                    jnp.concatenate(hs_b, axis=0))       # (T*B, H) backward

        # ----- layer 0: hoisted input projection (both dirs, N = 8H) --------
        gin0 = jnp.dot(x, wih0_ref[...], preferred_element_type=f32) + b0_ref[...]
        seq0_f, seq0_b = run_bidir(gin0, whh_ref[0, 0], whh_ref[0, 1])

        # ----- layer 1: hoisted input projection, split weights (no concat) --
        w1 = wih1_ref[...]                               # (2H, 8H)
        gin1 = (jnp.dot(seq0_f, w1[:H, :], preferred_element_type=f32)
                + jnp.dot(seq0_b, w1[H:, :], preferred_element_type=f32)
                + b1_ref[...])
        seq1_f, seq1_b = run_bidir(gin1, whh_ref[1, 0], whh_ref[1, 1])

        # ----- fc projection with split weights; lane-dense padded output ----
        fcw = fcw_ref[...]                               # (2H, V_pad)
        out_ref[...] = (jnp.dot(seq1_f, fcw[:H, :], preferred_element_type=f32)
                        + jnp.dot(seq1_b, fcw[H:, :], preferred_element_type=f32)
                        + fcb_ref[...])

    return kernel


# ---------------------------------------------------------------------------
# Wrapper: embedding gather, feature concat, weight prep, layout transposes.
# ---------------------------------------------------------------------------
@jax.jit
def decoder_rnn_forward(params, features, captions):
    # embedding(captions[:, :-1]) then prepend the image features -> (B, T, E)
    emb = jnp.take(params["embedding"], captions[:, :-1], axis=0)
    x = jnp.concatenate([features[:, None, :], emb], axis=1).astype(jnp.float32)
    B, T, E = x.shape
    H = params["whh"].shape[-1]
    V = params["fc_w"].shape[0]
    V_pad = ((V + 127) // 128) * 128                      # lane-dense output

    # time-major, flattened to (T*B, E) for the hoisted input projection
    x_tm = jnp.transpose(x, (1, 0, 2)).reshape(T * B, E)

    # Pre-transposed / direction-concatenated weights (no in-kernel .T/concat).
    wih0_cat = jnp.concatenate([params["wih0"][0].T, params["wih0"][1].T], axis=1)   # (E, 8H)
    wih1_cat = jnp.concatenate([params["wih1"][0].T, params["wih1"][1].T], axis=1)   # (2H, 8H)
    whh_t = jnp.transpose(params["whh"], (0, 1, 3, 2))                               # (2, 2, H, 4H)
    b0_cat = jnp.concatenate([params["bias"][0, 0], params["bias"][0, 1]], axis=-1)  # (1, 8H)
    b1_cat = jnp.concatenate([params["bias"][1, 0], params["bias"][1, 1]], axis=-1)  # (1, 8H)
    fcw_t = jnp.zeros((2 * H, V_pad), jnp.float32).at[:, :V].set(params["fc_w"].T)   # (2H, V_pad)
    fcb = jnp.zeros((1, V_pad), jnp.float32).at[:, :V].set(params["fc_b"])           # (1, V_pad)

    kernel = make_decoder_kernel(T, B, H)
    out_flat = pl.pallas_call(
        kernel,
        out_shape=jax.ShapeDtypeStruct((T * B, V_pad), jnp.float32),
        in_specs=[pl.BlockSpec(memory_space=pltpu.MemorySpace.VMEM)] * 8,
        out_specs=pl.BlockSpec(memory_space=pltpu.MemorySpace.VMEM),
    )(x_tm, wih0_cat, wih1_cat, whh_t, b0_cat, b1_cat, fcw_t, fcb)

    logits = out_flat.reshape(T, B, V_pad)[:, :, :V]
    return jnp.transpose(logits, (1, 0, 2))               # (B, T, V), batch_first


# ---------------------------------------------------------------------------
# Deterministic parameter init (shapes follow nn.Embedding / nn.LSTM / nn.Linear)
# ---------------------------------------------------------------------------
def init_params(key, embed_size, hidden_size, vocab_size):
    E, H, V = embed_size, hidden_size, vocab_size
    s = float(1.0 / (H ** 0.5))
    ks = jax.random.split(key, 8)
    embedding = 0.1 * jax.random.normal(ks[0], (V, E), jnp.float32)
    wih0 = jax.random.uniform(ks[1], (2, 4 * H, E), jnp.float32, -s, s)       # layer 0, per dir
    wih1 = jax.random.uniform(ks[2], (2, 4 * H, 2 * H), jnp.float32, -s, s)   # layer 1, per dir
    whh = jax.random.uniform(ks[3], (2, 2, 4 * H, H), jnp.float32, -s, s)     # [layer, dir]
    b_ih = jax.random.uniform(ks[4], (2, 2, 1, 4 * H), jnp.float32, -s, s)
    b_hh = jax.random.uniform(ks[5], (2, 2, 1, 4 * H), jnp.float32, -s, s)
    bias = b_ih + b_hh
    fc_w = jax.random.uniform(ks[6], (V, 2 * H), jnp.float32, -s, s)  # see TODO(synk)
    fc_b = jax.random.uniform(ks[7], (1, V), jnp.float32, -s, s)
    return dict(embedding=embedding, wih0=wih0, wih1=wih1, whh=whh,
                bias=bias, fc_w=fc_w, fc_b=fc_b)


# ---------------------------------------------------------------------------
# Pure-JAX reference (default matmul precision, same as the kernel)
# ---------------------------------------------------------------------------
def reference_forward(params, features, captions):
    emb = jnp.take(params["embedding"], captions[:, :-1], axis=0)
    x = jnp.concatenate([features[:, None, :], emb], axis=1).astype(jnp.float32)
    B, T, _ = x.shape
    H = params["whh"].shape[-1]

    def run_dir(xs, w_ih, w_hh, b, reverse):
        w_ih_t, w_hh_t = w_ih.T, w_hh.T

        def step(carry, x_t):
            h, c = carry
            gates = jnp.dot(x_t, w_ih_t) + jnp.dot(h, w_hh_t) + b
            i_g = jax.nn.sigmoid(gates[:, :H])
            f_g = jax.nn.sigmoid(gates[:, H:2 * H])
            g_g = jnp.tanh(gates[:, 2 * H:3 * H])
            o_g = jax.nn.sigmoid(gates[:, 3 * H:])
            c = f_g * c + i_g * g_g
            h = o_g * jnp.tanh(c)
            return (h, c), h

        xs_s = xs[::-1] if reverse else xs
        zero = jnp.zeros((B, H), jnp.float32)
        _, hs = lax.scan(step, (zero, zero), xs_s)
        return hs[::-1] if reverse else hs

    layer_in = jnp.transpose(x, (1, 0, 2))  # (T, B, E)
    for l in range(2):
        wih = params["wih0"] if l == 0 else params["wih1"]
        outs = [run_dir(layer_in, wih[d], params["whh"][l, d],
                        params["bias"][l, d], d == 1) for d in range(2)]
        layer_in = jnp.concatenate(outs, axis=-1)  # (T, B, 2H)
    logits = jnp.dot(layer_in, params["fc_w"].T) + params["fc_b"]
    return jnp.transpose(logits, (1, 0, 2))  # (B, T, V)


if __name__ == "__main__":
    B, T = 2, 8           # batch, caption length
    E, H, V = 32, 32, 64  # embed_size, hidden_size, vocab_size

    key = jax.random.PRNGKey(0)
    k_par, k_feat, k_cap = jax.random.split(key, 3)
    params = init_params(k_par, E, H, V)
    features = jax.random.normal(k_feat, (B, E), jnp.float32)
    captions = jax.random.randint(k_cap, (B, T), 0, V, dtype=jnp.int32)

    out = decoder_rnn_forward(params, features, captions)
    out = jax.block_until_ready(out)
    assert out.shape == (B, T, V), out.shape

    ref = reference_forward(params, features, captions)
    if not bool(jnp.allclose(out, ref, atol=2e-2, rtol=2e-2)):
        err = float(jnp.max(jnp.abs(out - ref)))
        raise AssertionError(f"Pallas kernel does not match JAX reference (max |diff|={err})")

    print("KERNEL_OK")
</pallas_src>

<mosaic_0001>
module attributes {stable_mosaic.version = 11 : i64} {
  func.func @kernel(%arg0: memref<16x32xf32, #tpu.memory_space<vmem>>, %arg1: memref<32x256xf32, #tpu.memory_space<vmem>>, %arg2: memref<64x256xf32, #tpu.memory_space<vmem>>, %arg3: memref<2x2x32x128xf32, #tpu.memory_space<vmem>>, %arg4: memref<1x256xf32, #tpu.memory_space<vmem>>, %arg5: memref<1x256xf32, #tpu.memory_space<vmem>>, %arg6: memref<64x128xf32, #tpu.memory_space<vmem>>, %arg7: memref<1x128xf32, #tpu.memory_space<vmem>>, %arg8: memref<16x128xf32, #tpu.memory_space<vmem>>) attributes {dimension_semantics = [], scalar_prefetch = 0 : i64, scratch_operands = 0 : i64, tpu.core_type = #tpu.core_type<tc>} {
    %c0 = arith.constant 0 : index
    %c0_0 = arith.constant 0 : index
    %0 = vector.load %arg0[%c0, %c0_0] : memref<16x32xf32, #tpu.memory_space<vmem>>, vector<16x32xf32>
    %c0_1 = arith.constant 0 : index
    %c0_2 = arith.constant 0 : index
    %1 = vector.load %arg1[%c0_1, %c0_2] : memref<32x256xf32, #tpu.memory_space<vmem>>, vector<32x256xf32>
    %cst = arith.constant dense<0.000000e+00> : vector<16x256xf32>
    %2 = tpu.matmul %0, %1, %cst {dimension_numbers = #tpu.dot_dimension_numbers<[1], [0], [0], [1], [0, 0, 1, 1], [], []>} : vector<16x32xf32>, vector<32x256xf32>, vector<16x256xf32> -> vector<16x256xf32>
    %c0_3 = arith.constant 0 : index
    %c0_4 = arith.constant 0 : index
    %3 = vector.load %arg4[%c0_3, %c0_4] : memref<1x256xf32, #tpu.memory_space<vmem>>, vector<1x256xf32>
    %4 = vector.broadcast %3 : vector<1x256xf32> to vector<16x256xf32>
    %5 = arith.addf %2, %4 : vector<16x256xf32>
    %c0_5 = arith.constant 0 : index
    %c0_6 = arith.constant 0 : index
    %c0_7 = arith.constant 0 : index
    %c0_8 = arith.constant 0 : index
    %6 = vector.load %arg3[%c0_5, %c0_6, %c0_7, %c0_8] : memref<2x2x32x128xf32, #tpu.memory_space<vmem>>, vector<1x1x32x128xf32>
    %7 = vector.shape_cast %6 : vector<1x1x32x128xf32> to vector<32x128xf32>
    %c0_9 = arith.constant 0 : index
    %c1 = arith.constant 1 : index
    %c0_10 = arith.constant 0 : index
    %c0_11 = arith.constant 0 : index
    %8 = vector.load %arg3[%c0_9, %c1, %c0_10, %c0_11] : memref<2x2x32x128xf32, #tpu.memory_space<vmem>>, vector<1x1x32x128xf32>
    %9 = vector.shape_cast %8 : vector<1x1x32x128xf32> to vector<32x128xf32>
    %10 = vector.extract_strided_slice %5 {offsets = [0, 0], sizes = [16, 128], strides = [1, 1]} : vector<16x256xf32> to vector<16x128xf32>
    %11 = vector.extract_strided_slice %5 {offsets = [0, 128], sizes = [16, 128], strides = [1, 1]} : vector<16x256xf32> to vector<16x128xf32>
    %cst_12 = arith.constant 0.000000e+00 : f32
    %12 = vector.broadcast %cst_12 : f32 to vector<2x32xf32>
    %cst_13 = arith.constant 0.000000e+00 : f32
    %13 = vector.broadcast %cst_13 : f32 to vector<4x32xf32>
    %14 = vector.extract_strided_slice %10 {offsets = [0, 0], sizes = [2, 128], strides = [1, 1]} : vector<16x128xf32> to vector<2x128xf32>
    %15 = vector.extract_strided_slice %11 {offsets = [14, 0], sizes = [2, 128], strides = [1, 1]} : vector<16x128xf32> to vector<2x128xf32>
    %16 = tpu.concatenate %14, %15 in 0 : vector<2x128xf32>, vector<2x128xf32> -> vector<4x128xf32>
    %cst_14 = arith.constant dense<0.000000e+00> : vector<2x128xf32>
    %17 = tpu.matmul %12, %7, %cst_14 {dimension_numbers = #tpu.dot_dimension_numbers<[1], [0], [0], [1], [0, 0, 1, 1], [], []>} : vector<2x32xf32>, vector<32x128xf32>, vector<2x128xf32> -> vector<2x128xf32>
    %cst_15 = arith.constant dense<0.000000e+00> : vector<2x128xf32>
    %18 = tpu.matmul %12, %9, %cst_15 {dimension_numbers = #tpu.dot_dimension_numbers<[1], [0], [0], [1], [0, 0, 1, 1], [], []>} : vector<2x32xf32>, vector<32x128xf32>, vector<2x128xf32> -> vector<2x128xf32>
    %19 = tpu.concatenate %17, %18 in 0 : vector<2x128xf32>, vector<2x128xf32> -> vector<4x128xf32>
    %20 = arith.addf %16, %19 : vector<4x128xf32>
    %21 = arith.negf %20 : vector<4x128xf32>
    %22 = math.exp %21 : vector<4x128xf32>
    %cst_16 = arith.constant 1.000000e+00 : f32
    %23 = vector.broadcast %cst_16 : f32 to vector<4x128xf32>
    %24 = arith.addf %23, %22 : vector<4x128xf32>
    %25 = arith.divf %23, %24 : vector<4x128xf32>
    %26 = math.tanh %20 : vector<4x128xf32>
    %27 = vector.extract_strided_slice %25 {offsets = [0, 0], sizes = [4, 32], strides = [1, 1]} : vector<4x128xf32> to vector<4x32xf32>
    %28 = vector.extract_strided_slice %25 {offsets = [0, 32], sizes = [4, 32], strides = [1, 1]} : vector<4x128xf32> to vector<4x32xf32>
    %29 = vector.extract_strided_slice %26 {offsets = [0, 64], sizes = [4, 32], strides = [1, 1]} : vector<4x128xf32> to vector<4x32xf32>
    %30 = vector.extract_strided_slice %25 {offsets = [0, 96], sizes = [4, 32], strides = [1, 1]} : vector<4x128xf32> to vector<4x32xf32>
    %31 = arith.mulf %28, %13 : vector<4x32xf32>
    %32 = arith.mulf %27, %29 : vector<4x32xf32>
    %33 = arith.addf %31, %32 : vector<4x32xf32>
    %34 = math.tanh %33 : vector<4x32xf32>
    %35 = arith.mulf %30, %34 : vector<4x32xf32>
    %36 = vector.extract_strided_slice %35 {offsets = [0, 0], sizes = [2, 32], strides = [1, 1]} : vector<4x32xf32> to vector<2x32xf32>
    %37 = vector.extract_strided_slice %35 {offsets = [2, 0], sizes = [2, 32], strides = [1, 1]} : vector<4x32xf32> to vector<2x32xf32>
    %38 = vector.extract_strided_slice %10 {offsets = [2, 0], sizes = [2, 128], strides = [1, 1]} : vector<16x128xf32> to vector<2x128xf32>
    %39 = vector.extract_strided_slice %11 {offsets = [12, 0], sizes = [2, 128], strides = [1, 1]} : vector<16x128xf32> to vector<2x128xf32>
    %40 = tpu.concatenate %38, %39 in 0 : vector<2x128xf32>, vector<2x128xf32> -> vector<4x128xf32>
    %cst_17 = arith.constant dense<0.000000e+00> : vector<2x128xf32>
    %41 = tpu.matmul %36, %7, %cst_17 {dimension_numbers = #tpu.dot_dimension_numbers<[1], [0], [0], [1], [0, 0, 1, 1], [], []>} : vector<2x32xf32>, vector<32x128xf32>, vector<2x128xf32> -> vector<2x128xf32>
    %cst_18 = arith.constant dense<0.000000e+00> : vector<2x128xf32>
    %42 = tpu.matmul %37, %9, %cst_18 {dimension_numbers = #tpu.dot_dimension_numbers<[1], [0], [0], [1], [0, 0, 1, 1], [], []>} : vector<2x32xf32>, vector<32x128xf32>, vector<2x128xf32> -> vector<2x128xf32>
    %43 = tpu.concatenate %41, %42 in 0 : vector<2x128xf32>, vector<2x128xf32> -> vector<4x128xf32>
    %44 = arith.addf %40, %43 : vector<4x128xf32>
    %45 = arith.negf %44 : vector<4x128xf32>
    %46 = math.exp %45 : vector<4x128xf32>
    %cst_19 = arith.constant 1.000000e+00 : f32
    %47 = vector.broadcast %cst_19 : f32 to vector<4x128xf32>
    %48 = arith.addf %47, %46 : vector<4x128xf32>
    %49 = arith.divf %47, %48 : vector<4x128xf32>
    %50 = math.tanh %44 : vector<4x128xf32>
    %51 = vector.extract_strided_slice %49 {offsets = [0, 0], sizes = [4, 32], strides = [1, 1]} : vector<4x128xf32> to vector<4x32xf32>
    %52 = vector.extract_strided_slice %49 {offsets = [0, 32], sizes = [4, 32], strides = [1, 1]} : vector<4x128xf32> to vector<4x32xf32>
    %53 = vector.extract_strided_slice %50 {offsets = [0, 64], sizes = [4, 32], strides = [1, 1]} : vector<4x128xf32> to vector<4x32xf32>
    %54 = vector.extract_strided_slice %49 {offsets = [0, 96], sizes = [4, 32], strides = [1, 1]} : vector<4x128xf32> to vector<4x32xf32>
    %55 = arith.mulf %52, %33 : vector<4x32xf32>
    %56 = arith.mulf %51, %53 : vector<4x32xf32>
    %57 = arith.addf %55, %56 : vector<4x32xf32>
    %58 = math.tanh %57 : vector<4x32xf32>
    %59 = arith.mulf %54, %58 : vector<4x32xf32>
    %60 = vector.extract_strided_slice %59 {offsets = [0, 0], sizes = [2, 32], strides = [1, 1]} : vector<4x32xf32> to vector<2x32xf32>
    %61 = vector.extract_strided_slice %59 {offsets = [2, 0], sizes = [2, 32], strides = [1, 1]} : vector<4x32xf32> to vector<2x32xf32>
    %62 = vector.extract_strided_slice %10 {offsets = [4, 0], sizes = [2, 128], strides = [1, 1]} : vector<16x128xf32> to vector<2x128xf32>
    %63 = vector.extract_strided_slice %11 {offsets = [10, 0], sizes = [2, 128], strides = [1, 1]} : vector<16x128xf32> to vector<2x128xf32>
    %64 = tpu.concatenate %62, %63 in 0 : vector<2x128xf32>, vector<2x128xf32> -> vector<4x128xf32>
    %cst_20 = arith.constant dense<0.000000e+00> : vector<2x128xf32>
    %65 = tpu.matmul %60, %7, %cst_20 {dimension_numbers = #tpu.dot_dimension_numbers<[1], [0], [0], [1], [0, 0, 1, 1], [], []>} : vector<2x32xf32>, vector<32x128xf32>, vector<2x128xf32> -> vector<2x128xf32>
    %cst_21 = arith.constant dense<0.000000e+00> : vector<2x128xf32>
    %66 = tpu.matmul %61, %9, %cst_21 {dimension_numbers = #tpu.dot_dimension_numbers<[1], [0], [0], [1], [0, 0, 1, 1], [], []>} : vector<2x32xf32>, vector<32x128xf32>, vector<2x128xf32> -> vector<2x128xf32>
    %67 = tpu.concatenate %65, %66 in 0 : vector<2x128xf32>, vector<2x128xf32> -> vector<4x128xf32>
    %68 = arith.addf %64, %67 : vector<4x128xf32>
    %69 = arith.negf %68 : vector<4x128xf32>
    %70 = math.exp %69 : vector<4x128xf32>
    %cst_22 = arith.constant 1.000000e+00 : f32
    %71 = vector.broadcast %cst_22 : f32 to vector<4x128xf32>
    %72 = arith.addf %71, %70 : vector<4x128xf32>
    %73 = arith.divf %71, %72 : vector<4x128xf32>
    %74 = math.tanh %68 : vector<4x128xf32>
    %75 = vector.extract_strided_slice %73 {offsets = [0, 0], sizes = [4, 32], strides = [1, 1]} : vector<4x128xf32> to vector<4x32xf32>
    %76 = vector.extract_strided_slice %73 {offsets = [0, 32], sizes = [4, 32], strides = [1, 1]} : vector<4x128xf32> to vector<4x32xf32>
    %77 = vector.extract_strided_slice %74 {offsets = [0, 64], sizes = [4, 32], strides = [1, 1]} : vector<4x128xf32> to vector<4x32xf32>
    %78 = vector.extract_strided_slice %73 {offsets = [0, 96], sizes = [4, 32], strides = [1, 1]} : vector<4x128xf32> to vector<4x32xf32>
    %79 = arith.mulf %76, %57 : vector<4x32xf32>
    %80 = arith.mulf %75, %77 : vector<4x32xf32>
    %81 = arith.addf %79, %80 : vector<4x32xf32>
    %82 = math.tanh %81 : vector<4x32xf32>
    %83 = arith.mulf %78, %82 : vector<4x32xf32>
    %84 = vector.extract_strided_slice %83 {offsets = [0, 0], sizes = [2, 32], strides = [1, 1]} : vector<4x32xf32> to vector<2x32xf32>
    %85 = vector.extract_strided_slice %83 {offsets = [2, 0], sizes = [2, 32], strides = [1, 1]} : vector<4x32xf32> to vector<2x32xf32>
    %86 = vector.extract_strided_slice %10 {offsets = [6, 0], sizes = [2, 128], strides = [1, 1]} : vector<16x128xf32> to vector<2x128xf32>
    %87 = vector.extract_strided_slice %11 {offsets = [8, 0], sizes = [2, 128], strides = [1, 1]} : vector<16x128xf32> to vector<2x128xf32>
    %88 = tpu.concatenate %86, %87 in 0 : vector<2x128xf32>, vector<2x128xf32> -> vector<4x128xf32>
    %cst_23 = arith.constant dense<0.000000e+00> : vector<2x128xf32>
    %89 = tpu.matmul %84, %7, %cst_23 {dimension_numbers = #tpu.dot_dimension_numbers<[1], [0], [0], [1], [0, 0, 1, 1], [], []>} : vector<2x32xf32>, vector<32x128xf32>, vector<2x128xf32> -> vector<2x128xf32>
    %cst_24 = arith.constant dense<0.000000e+00> : vector<2x128xf32>
    %90 = tpu.matmul %85, %9, %cst_24 {dimension_numbers = #tpu.dot_dimension_numbers<[1], [0], [0], [1], [0, 0, 1, 1], [], []>} : vector<2x32xf32>, vector<32x128xf32>, vector<2x128xf32> -> vector<2x128xf32>
    %91 = tpu.concatenate %89, %90 in 0 : vector<2x128xf32>, vector<2x128xf32> -> vector<4x128xf32>
    %92 = arith.addf %88, %91 : vector<4x128xf32>
    %93 = arith.negf %92 : vector<4x128xf32>
    %94 = math.exp %93 : vector<4x128xf32>
    %cst_25 = arith.constant 1.000000e+00 : f32
    %95 = vector.broadcast %cst_25 : f32 to vector<4x128xf32>
    %96 = arith.addf %95, %94 : vector<4x128xf32>
    %97 = arith.divf %95, %96 : vector<4x128xf32>
    %98 = math.tanh %92 : vector<4x128xf32>
    %99 = vector.extract_strided_slice %97 {offsets = [0, 0], sizes = [4, 32], strides = [1, 1]} : vector<4x128xf32> to vector<4x32xf32>
    %100 = vector.extract_strided_slice %97 {offsets = [0, 32], sizes = [4, 32], strides = [1, 1]} : vector<4x128xf32> to vector<4x32xf32>
    %101 = vector.extract_strided_slice %98 {offsets = [0, 64], sizes = [4, 32], strides = [1, 1]} : vector<4x128xf32> to vector<4x32xf32>
    %102 = vector.extract_strided_slice %97 {offsets = [0, 96], sizes = [4, 32], strides = [1, 1]} : vector<4x128xf32> to vector<4x32xf32>
    %103 = arith.mulf %100, %81 : vector<4x32xf32>
    %104 = arith.mulf %99, %101 : vector<4x32xf32>
    %105 = arith.addf %103, %104 : vector<4x32xf32>
    %106 = math.tanh %105 : vector<4x32xf32>
    %107 = arith.mulf %102, %106 : vector<4x32xf32>
    %108 = vector.extract_strided_slice %107 {offsets = [0, 0], sizes = [2, 32], strides = [1, 1]} : vector<4x32xf32> to vector<2x32xf32>
    %109 = vector.extract_strided_slice %107 {offsets = [2, 0], sizes = [2, 32], strides = [1, 1]} : vector<4x32xf32> to vector<2x32xf32>
    %110 = vector.extract_strided_slice %10 {offsets = [8, 0], sizes = [2, 128], strides = [1, 1]} : vector<16x128xf32> to vector<2x128xf32>
    %111 = vector.extract_strided_slice %11 {offsets = [6, 0], sizes = [2, 128], strides = [1, 1]} : vector<16x128xf32> to vector<2x128xf32>
    %112 = tpu.concatenate %110, %111 in 0 : vector<2x128xf32>, vector<2x128xf32> -> vector<4x128xf32>
    %cst_26 = arith.constant dense<0.000000e+00> : vector<2x128xf32>
    %113 = tpu.matmul %108, %7, %cst_26 {dimension_numbers = #tpu.dot_dimension_numbers<[1], [0], [0], [1], [0, 0, 1, 1], [], []>} : vector<2x32xf32>, vector<32x128xf32>, vector<2x128xf32> -> vector<2x128xf32>
    %cst_27 = arith.constant dense<0.000000e+00> : vector<2x128xf32>
    %114 = tpu.matmul %109, %9, %cst_27 {dimension_numbers = #tpu.dot_dimension_numbers<[1], [0], [0], [1], [0, 0, 1, 1], [], []>} : vector<2x32xf32>, vector<32x128xf32>, vector<2x128xf32> -> vector<2x128xf32>
    %115 = tpu.concatenate %113, %114 in 0 : vector<2x128xf32>, vector<2x128xf32> -> vector<4x128xf32>
    %116 = arith.addf %112, %115 : vector<4x128xf32>
    %117 = arith.negf %116 : vector<4x128xf32>
    %118 = math.exp %117 : vector<4x128xf32>
    %cst_28 = arith.constant 1.000000e+00 : f32
    %119 = vector.broadcast %cst_28 : f32 to vector<4x128xf32>
    %120 = arith.addf %119, %118 : vector<4x128xf32>
    %121 = arith.divf %119, %120 : vector<4x128xf32>
    %122 = math.tanh %116 : vector<4x128xf32>
    %123 = vector.extract_strided_slice %121 {offsets = [0, 0], sizes = [4, 32], strides = [1, 1]} : vector<4x128xf32> to vector<4x32xf32>
    %124 = vector.extract_strided_slice %121 {offsets = [0, 32], sizes = [4, 32], strides = [1, 1]} : vector<4x128xf32> to vector<4x32xf32>
    %125 = vector.extract_strided_slice %122 {offsets = [0, 64], sizes = [4, 32], strides = [1, 1]} : vector<4x128xf32> to vector<4x32xf32>
    %126 = vector.extract_strided_slice %121 {offsets = [0, 96], sizes = [4, 32], strides = [1, 1]} : vector<4x128xf32> to vector<4x32xf32>
    %127 = arith.mulf %124, %105 : vector<4x32xf32>
    %128 = arith.mulf %123, %125 : vector<4x32xf32>
    %129 = arith.addf %127, %128 : vector<4x32xf32>
    %130 = math.tanh %129 : vector<4x32xf32>
    %131 = arith.mulf %126, %130 : vector<4x32xf32>
    %132 = vector.extract_strided_slice %131 {offsets = [0, 0], sizes = [2, 32], strides = [1, 1]} : vector<4x32xf32> to vector<2x32xf32>
    %133 = vector.extract_strided_slice %131 {offsets = [2, 0], sizes = [2, 32], strides = [1, 1]} : vector<4x32xf32> to vector<2x32xf32>
    %134 = vector.extract_strided_slice %10 {offsets = [10, 0], sizes = [2, 128], strides = [1, 1]} : vector<16x128xf32> to vector<2x128xf32>
    %135 = vector.extract_strided_slice %11 {offsets = [4, 0], sizes = [2, 128], strides = [1, 1]} : vector<16x128xf32> to vector<2x128xf32>
    %136 = tpu.concatenate %134, %135 in 0 : vector<2x128xf32>, vector<2x128xf32> -> vector<4x128xf32>
    %cst_29 = arith.constant dense<0.000000e+00> : vector<2x128xf32>
    %137 = tpu.matmul %132, %7, %cst_29 {dimension_numbers = #tpu.dot_dimension_numbers<[1], [0], [0], [1], [0, 0, 1, 1], [], []>} : vector<2x32xf32>, vector<32x128xf32>, vector<2x128xf32> -> vector<2x128xf32>
    %cst_30 = arith.constant dense<0.000000e+00> : vector<2x128xf32>
    %138 = tpu.matmul %133, %9, %cst_30 {dimension_numbers = #tpu.dot_dimension_numbers<[1], [0], [0], [1], [0, 0, 1, 1], [], []>} : vector<2x32xf32>, vector<32x128xf32>, vector<2x128xf32> -> vector<2x128xf32>
    %139 = tpu.concatenate %137, %138 in 0 : vector<2x128xf32>, vector<2x128xf32> -> vector<4x128xf32>
    %140 = arith.addf %136, %139 : vector<4x128xf32>
    %141 = arith.negf %140 : vector<4x128xf32>
    %142 = math.exp %141 : vector<4x128xf32>
    %cst_31 = arith.constant 1.000000e+00 : f32
    %143 = vector.broadcast %cst_31 : f32 to vector<4x128xf32>
    %144 = arith.addf %143, %142 : vector<4x128xf32>
    %145 = arith.divf %143, %144 : vector<4x128xf32>
    %146 = math.tanh %140 : vector<4x128xf32>
    %147 = vector.extract_strided_slice %145 {offsets = [0, 0], sizes = [4, 32], strides = [1, 1]} : vector<4x128xf32> to vector<4x32xf32>
    %148 = vector.extract_strided_slice %145 {offsets = [0, 32], sizes = [4, 32], strides = [1, 1]} : vector<4x128xf32> to vector<4x32xf32>
    %149 = vector.extract_strided_slice %146 {offsets = [0, 64], sizes = [4, 32], strides = [1, 1]} : vector<4x128xf32> to vector<4x32xf32>
    %150 = vector.extract_strided_slice %145 {offsets = [0, 96], sizes = [4, 32], strides = [1, 1]} : vector<4x128xf32> to vector<4x32xf32>
    %151 = arith.mulf %148, %129 : vector<4x32xf32>
    %152 = arith.mulf %147, %149 : vector<4x32xf32>
    %153 = arith.addf %151, %152 : vector<4x32xf32>
    %154 = math.tanh %153 : vector<4x32xf32>
    %155 = arith.mulf %150, %154 : vector<4x32xf32>
    %156 = vector.extract_strided_slice %155 {offsets = [0, 0], sizes = [2, 32], strides = [1, 1]} : vector<4x32xf32> to vector<2x32xf32>
    %157 = vector.extract_strided_slice %155 {offsets = [2, 0], sizes = [2, 32], strides = [1, 1]} : vector<4x32xf32> to vector<2x32xf32>
    %158 = vector.extract_strided_slice %10 {offsets = [12, 0], sizes = [2, 128], strides = [1, 1]} : vector<16x128xf32> to vector<2x128xf32>
    %159 = vector.extract_strided_slice %11 {offsets = [2, 0], sizes = [2, 128], strides = [1, 1]} : vector<16x128xf32> to vector<2x128xf32>
    %160 = tpu.concatenate %158, %159 in 0 : vector<2x128xf32>, vector<2x128xf32> -> vector<4x128xf32>
    %cst_32 = arith.constant dense<0.000000e+00> : vector<2x128xf32>
    %161 = tpu.matmul %156, %7, %cst_32 {dimension_numbers = #tpu.dot_dimension_numbers<[1], [0], [0], [1], [0, 0, 1, 1], [], []>} : vector<2x32xf32>, vector<32x128xf32>, vector<2x128xf32> -> vector<2x128xf32>
    %cst_33 = arith.constant dense<0.000000e+00> : vector<2x128xf32>
    %162 = tpu.matmul %157, %9, %cst_33 {dimension_numbers = #tpu.dot_dimension_numbers<[1], [0], [0], [1], [0, 0, 1, 1], [], []>} : vector<2x32xf32>, vector<32x128xf32>, vector<2x128xf32> -> vector<2x128xf32>
    %163 = tpu.concatenate %161, %162 in 0 : vector<2x128xf32>, vector<2x128xf32> -> vector<4x128xf32>
    %164 = arith.addf %160, %163 : vector<4x128xf32>
    %165 = arith.negf %164 : vector<4x128xf32>
    %166 = math.exp %165 : vector<4x128xf32>
    %cst_34 = arith.constant 1.000000e+00 : f32
    %167 = vector.broadcast %cst_34 : f32 to vector<4x128xf32>
    %168 = arith.addf %167, %166 : vector<4x128xf32>
    %169 = arith.divf %167, %168 : vector<4x128xf32>
    %170 = math.tanh %164 : vector<4x128xf32>
    %171 = vector.extract_strided_slice %169 {offsets = [0, 0], sizes = [4, 32], strides = [1, 1]} : vector<4x128xf32> to vector<4x32xf32>
    %172 = vector.extract_strided_slice %169 {offsets = [0, 32], sizes = [4, 32], strides = [1, 1]} : vector<4x128xf32> to vector<4x32xf32>
    %173 = vector.extract_strided_slice %170 {offsets = [0, 64], sizes = [4, 32], strides = [1, 1]} : vector<4x128xf32> to vector<4x32xf32>
    %174 = vector.extract_strided_slice %169 {offsets = [0, 96], sizes = [4, 32], strides = [1, 1]} : vector<4x128xf32> to vector<4x32xf32>
    %175 = arith.mulf %172, %153 : vector<4x32xf32>
    %176 = arith.mulf %171, %173 : vector<4x32xf32>
    %177 = arith.addf %175, %176 : vector<4x32xf32>
    %178 = math.tanh %177 : vector<4x32xf32>
    %179 = arith.mulf %174, %178 : vector<4x32xf32>
    %180 = vector.extract_strided_slice %179 {offsets = [0, 0], sizes = [2, 32], strides = [1, 1]} : vector<4x32xf32> to vector<2x32xf32>
    %181 = vector.extract_strided_slice %179 {offsets = [2, 0], sizes = [2, 32], strides = [1, 1]} : vector<4x32xf32> to vector<2x32xf32>
    %182 = vector.extract_strided_slice %10 {offsets = [14, 0], sizes = [2, 128], strides = [1, 1]} : vector<16x128xf32> to vector<2x128xf32>
    %183 = vector.extract_strided_slice %11 {offsets = [0, 0], sizes = [2, 128], strides = [1, 1]} : vector<16x128xf32> to vector<2x128xf32>
    %184 = tpu.concatenate %182, %183 in 0 : vector<2x128xf32>, vector<2x128xf32> -> vector<4x128xf32>
    %cst_35 = arith.constant dense<0.000000e+00> : vector<2x128xf32>
    %185 = tpu.matmul %180, %7, %cst_35 {dimension_numbers = #tpu.dot_dimension_numbers<[1], [0], [0], [1], [0, 0, 1, 1], [], []>} : vector<2x32xf32>, vector<32x128xf32>, vector<2x128xf32> -> vector<2x128xf32>
    %cst_36 = arith.constant dense<0.000000e+00> : vector<2x128xf32>
    %186 = tpu.matmul %181, %9, %cst_36 {dimension_numbers = #tpu.dot_dimension_numbers<[1], [0], [0], [1], [0, 0, 1, 1], [], []>} : vector<2x32xf32>, vector<32x128xf32>, vector<2x128xf32> -> vector<2x128xf32>
    %187 = tpu.concatenate %185, %186 in 0 : vector<2x128xf32>, vector<2x128xf32> -> vector<4x128xf32>
    %188 = arith.addf %184, %187 : vector<4x128xf32>
    %189 = arith.negf %188 : vector<4x128xf32>
    %190 = math.exp %189 : vector<4x128xf32>
    %cst_37 = arith.constant 1.000000e+00 : f32
    %191 = vector.broadcast %cst_37 : f32 to vector<4x128xf32>
    %192 = arith.addf %191, %190 : vector<4x128xf32>
    %193 = arith.divf %191, %192 : vector<4x128xf32>
    %194 = math.tanh %188 : vector<4x128xf32>
    %195 = vector.extract_strided_slice %193 {offsets = [0, 0], sizes = [4, 32], strides = [1, 1]} : vector<4x128xf32> to vector<4x32xf32>
    %196 = vector.extract_strided_slice %193 {offsets = [0, 32], sizes = [4, 32], strides = [1, 1]} : vector<4x128xf32> to vector<4x32xf32>
    %197 = vector.extract_strided_slice %194 {offsets = [0, 64], sizes = [4, 32], strides = [1, 1]} : vector<4x128xf32> to vector<4x32xf32>
    %198 = vector.extract_strided_slice %193 {offsets = [0, 96], sizes = [4, 32], strides = [1, 1]} : vector<4x128xf32> to vector<4x32xf32>
    %199 = arith.mulf %196, %177 : vector<4x32xf32>
    %200 = arith.mulf %195, %197 : vector<4x32xf32>
    %201 = arith.addf %199, %200 : vector<4x32xf32>
    %202 = math.tanh %201 : vector<4x32xf32>
    %203 = arith.mulf %198, %202 : vector<4x32xf32>
    %204 = vector.extract_strided_slice %203 {offsets = [0, 0], sizes = [2, 32], strides = [1, 1]} : vector<4x32xf32> to vector<2x32xf32>
    %205 = vector.extract_strided_slice %203 {offsets = [2, 0], sizes = [2, 32], strides = [1, 1]} : vector<4x32xf32> to vector<2x32xf32>
    %206 = tpu.concatenate %36, %60, %84, %108, %132, %156, %180, %204 in 0 : vector<2x32xf32>, vector<2x32xf32>, vector<2x32xf32>, vector<2x32xf32>, vector<2x32xf32>, vector<2x32xf32>, vector<2x32xf32>, vector<2x32xf32> -> vector<16x32xf32>
    %207 = tpu.concatenate %205, %181, %157, %133, %109, %85, %61, %37 in 0 : vector<2x32xf32>, vector<2x32xf32>, vector<2x32xf32>, vector<2x32xf32>, vector<2x32xf32>, vector<2x32xf32>, vector<2x32xf32>, vector<2x32xf32> -> vector<16x32xf32>
    %c0_38 = arith.constant 0 : index
    %c0_39 = arith.constant 0 : index
    %208 = vector.load %arg2[%c0_38, %c0_39] : memref<64x256xf32, #tpu.memory_space<vmem>>, vector<64x256xf32>
    %209 = vector.extract_strided_slice %208 {offsets = [0, 0], sizes = [32, 256], strides = [1, 1]} : vector<64x256xf32> to vector<32x256xf32>
    %cst_40 = arith.constant dense<0.000000e+00> : vector<16x256xf32>
    %210 = tpu.matmul %206, %209, %cst_40 {dimension_numbers = #tpu.dot_dimension_numbers<[1], [0], [0], [1], [0, 0, 1, 1], [], []>} : vector<16x32xf32>, vector<32x256xf32>, vector<16x256xf32> -> vector<16x256xf32>
    %211 = vector.extract_strided_slice %208 {offsets = [32, 0], sizes = [32, 256], strides = [1, 1]} : vector<64x256xf32> to vector<32x256xf32>
    %cst_41 = arith.constant dense<0.000000e+00> : vector<16x256xf32>
    %212 = tpu.matmul %207, %211, %cst_41 {dimension_numbers = #tpu.dot_dimension_numbers<[1], [0], [0], [1], [0, 0, 1, 1], [], []>} : vector<16x32xf32>, vector<32x256xf32>, vector<16x256xf32> -> vector<16x256xf32>
    %213 = arith.addf %210, %212 : vector<16x256xf32>
    %c0_42 = arith.constant 0 : index
    %c0_43 = arith.constant 0 : index
    %214 = vector.load %arg5[%c0_42, %c0_43] : memref<1x256xf32, #tpu.memory_space<vmem>>, vector<1x256xf32>
    %215 = vector.broadcast %214 : vector<1x256xf32> to vector<16x256xf32>
    %216 = arith.addf %213, %215 : vector<16x256xf32>
    %c1_44 = arith.constant 1 : index
    %c0_45 = arith.constant 0 : index
    %c0_46 = arith.constant 0 : index
    %c0_47 = arith.constant 0 : index
    %217 = vector.load %arg3[%c1_44, %c0_45, %c0_46, %c0_47] : memref<2x2x32x128xf32, #tpu.memory_space<vmem>>, vector<1x1x32x128xf32>
    %218 = vector.shape_cast %217 : vector<1x1x32x128xf32> to vector<32x128xf32>
    %c1_48 = arith.constant 1 : index
    %c1_49 = arith.constant 1 : index
    %c0_50 = arith.constant 0 : index
    %c0_51 = arith.constant 0 : index
    %219 = vector.load %arg3[%c1_48, %c1_49, %c0_50, %c0_51] : memref<2x2x32x128xf32, #tpu.memory_space<vmem>>, vector<1x1x32x128xf32>
    %220 = vector.shape_cast %219 : vector<1x1x32x128xf32> to vector<32x128xf32>
    %221 = vector.extract_strided_slice %216 {offsets = [0, 0], sizes = [16, 128], strides = [1, 1]} : vector<16x256xf32> to vector<16x128xf32>
    %222 = vector.extract_strided_slice %216 {offsets = [0, 128], sizes = [16, 128], strides = [1, 1]} : vector<16x256xf32> to vector<16x128xf32>
    %cst_52 = arith.constant 0.000000e+00 : f32
    %223 = vector.broadcast %cst_52 : f32 to vector<2x32xf32>
    %cst_53 = arith.constant 0.000000e+00 : f32
    %224 = vector.broadcast %cst_53 : f32 to vector<4x32xf32>
    %225 = vector.extract_strided_slice %221 {offsets = [0, 0], sizes = [2, 128], strides = [1, 1]} : vector<16x128xf32> to vector<2x128xf32>
    %226 = vector.extract_strided_slice %222 {offsets = [14, 0], sizes = [2, 128], strides = [1, 1]} : vector<16x128xf32> to vector<2x128xf32>
    %227 = tpu.concatenate %225, %226 in 0 : vector<2x128xf32>, vector<2x128xf32> -> vector<4x128xf32>
    %cst_54 = arith.constant dense<0.000000e+00> : vector<2x128xf32>
    %228 = tpu.matmul %223, %218, %cst_54 {dimension_numbers = #tpu.dot_dimension_numbers<[1], [0], [0], [1], [0, 0, 1, 1], [], []>} : vector<2x32xf32>, vector<32x128xf32>, vector<2x128xf32> -> vector<2x128xf32>
    %cst_55 = arith.constant dense<0.000000e+00> : vector<2x128xf32>
    %229 = tpu.matmul %223, %220, %cst_55 {dimension_numbers = #tpu.dot_dimension_numbers<[1], [0], [0], [1], [0, 0, 1, 1], [], []>} : vector<2x32xf32>, vector<32x128xf32>, vector<2x128xf32> -> vector<2x128xf32>
    %230 = tpu.concatenate %228, %229 in 0 : vector<2x128xf32>, vector<2x128xf32> -> vector<4x128xf32>
    %231 = arith.addf %227, %230 : vector<4x128xf32>
    %232 = arith.negf %231 : vector<4x128xf32>
    %233 = math.exp %232 : vector<4x128xf32>
    %cst_56 = arith.constant 1.000000e+00 : f32
    %234 = vector.broadcast %cst_56 : f32 to vector<4x128xf32>
    %235 = arith.addf %234, %233 : vector<4x128xf32>
    %236 = arith.divf %234, %235 : vector<4x128xf32>
    %237 = math.tanh %231 : vector<4x128xf32>
    %238 = vector.extract_strided_slice %236 {offsets = [0, 0], sizes = [4, 32], strides = [1, 1]} : vector<4x128xf32> to vector<4x32xf32>
    %239 = vector.extract_strided_slice %236 {offsets = [0, 32], sizes = [4, 32], strides = [1, 1]} : vector<4x128xf32> to vector<4x32xf32>
    %240 = vector.extract_strided_slice %237 {offsets = [0, 64], sizes = [4, 32], strides = [1, 1]} : vector<4x128xf32> to vector<4x32xf32>
    %241 = vector.extract_strided_slice %236 {offsets = [0, 96], sizes = [4, 32], strides = [1, 1]} : vector<4x128xf32> to vector<4x32xf32>
    %242 = arith.mulf %239, %224 : vector<4x32xf32>
    %243 = arith.mulf %238, %240 : vector<4x32xf32>
    %244 = arith.addf %242, %243 : vector<4x32xf32>
    %245 = math.tanh %244 : vector<4x32xf32>
    %246 = arith.mulf %241, %245 : vector<4x32xf32>
    %247 = vector.extract_strided_slice %246 {offsets = [0, 0], sizes = [2, 32], strides = [1, 1]} : vector<4x32xf32> to vector<2x32xf32>
    %248 = vector.extract_strided_slice %246 {offsets = [2, 0], sizes = [2, 32], strides = [1, 1]} : vector<4x32xf32> to vector<2x32xf32>
    %249 = vector.extract_strided_slice %221 {offsets = [2, 0], sizes = [2, 128], strides = [1, 1]} : vector<16x128xf32> to vector<2x128xf32>
    %250 = vector.extract_strided_slice %222 {offsets = [12, 0], sizes = [2, 128], strides = [1, 1]} : vector<16x128xf32> to vector<2x128xf32>
    %251 = tpu.concatenate %249, %250 in 0 : vector<2x128xf32>, vector<2x128xf32> -> vector<4x128xf32>
    %cst_57 = arith.constant dense<0.000000e+00> : vector<2x128xf32>
    %252 = tpu.matmul %247, %218, %cst_57 {dimension_numbers = #tpu.dot_dimension_numbers<[1], [0], [0], [1], [0, 0, 1, 1], [], []>} : vector<2x32xf32>, vector<32x128xf32>, vector<2x128xf32> -> vector<2x128xf32>
    %cst_58 = arith.constant dense<0.000000e+00> : vector<2x128xf32>
    %253 = tpu.matmul %248, %220, %cst_58 {dimension_numbers = #tpu.dot_dimension_numbers<[1], [0], [0], [1], [0, 0, 1, 1], [], []>} : vector<2x32xf32>, vector<32x128xf32>, vector<2x128xf32> -> vector<2x128xf32>
    %254 = tpu.concatenate %252, %253 in 0 : vector<2x128xf32>, vector<2x128xf32> -> vector<4x128xf32>
    %255 = arith.addf %251, %254 : vector<4x128xf32>
    %256 = arith.negf %255 : vector<4x128xf32>
    %257 = math.exp %256 : vector<4x128xf32>
    %cst_59 = arith.constant 1.000000e+00 : f32
    %258 = vector.broadcast %cst_59 : f32 to vector<4x128xf32>
    %259 = arith.addf %258, %257 : vector<4x128xf32>
    %260 = arith.divf %258, %259 : vector<4x128xf32>
    %261 = math.tanh %255 : vector<4x128xf32>
    %262 = vector.extract_strided_slice %260 {offsets = [0, 0], sizes = [4, 32], strides = [1, 1]} : vector<4x128xf32> to vector<4x32xf32>
    %263 = vector.extract_strided_slice %260 {offsets = [0, 32], sizes = [4, 32], strides = [1, 1]} : vector<4x128xf32> to vector<4x32xf32>
    %264 = vector.extract_strided_slice %261 {offsets = [0, 64], sizes = [4, 32], strides = [1, 1]} : vector<4x128xf32> to vector<4x32xf32>
    %265 = vector.extract_strided_slice %260 {offsets = [0, 96], sizes = [4, 32], strides = [1, 1]} : vector<4x128xf32> to vector<4x32xf32>
    %266 = arith.mulf %263, %244 : vector<4x32xf32>
    %267 = arith.mulf %262, %264 : vector<4x32xf32>
    %268 = arith.addf %266, %267 : vector<4x32xf32>
    %269 = math.tanh %268 : vector<4x32xf32>
    %270 = arith.mulf %265, %269 : vector<4x32xf32>
    %271 = vector.extract_strided_slice %270 {offsets = [0, 0], sizes = [2, 32], strides = [1, 1]} : vector<4x32xf32> to vector<2x32xf32>
    %272 = vector.extract_strided_slice %270 {offsets = [2, 0], sizes = [2, 32], strides = [1, 1]} : vector<4x32xf32> to vector<2x32xf32>
    %273 = vector.extract_strided_slice %221 {offsets = [4, 0], sizes = [2, 128], strides = [1, 1]} : vector<16x128xf32> to vector<2x128xf32>
    %274 = vector.extract_strided_slice %222 {offsets = [10, 0], sizes = [2, 128], strides = [1, 1]} : vector<16x128xf32> to vector<2x128xf32>
    %275 = tpu.concatenate %273, %274 in 0 : vector<2x128xf32>, vector<2x128xf32> -> vector<4x128xf32>
    %cst_60 = arith.constant dense<0.000000e+00> : vector<2x128xf32>
    %276 = tpu.matmul %271, %218, %cst_60 {dimension_numbers = #tpu.dot_dimension_numbers<[1], [0], [0], [1], [0, 0, 1, 1], [], []>} : vector<2x32xf32>, vector<32x128xf32>, vector<2x128xf32> -> vector<2x128xf32>
    %cst_61 = arith.constant dense<0.000000e+00> : vector<2x128xf32>
    %277 = tpu.matmul %272, %220, %cst_61 {dimension_numbers = #tpu.dot_dimension_numbers<[1], [0], [0], [1], [0, 0, 1, 1], [], []>} : vector<2x32xf32>, vector<32x128xf32>, vector<2x128xf32> -> vector<2x128xf32>
    %278 = tpu.concatenate %276, %277 in 0 : vector<2x128xf32>, vector<2x128xf32> -> vector<4x128xf32>
    %279 = arith.addf %275, %278 : vector<4x128xf32>
    %280 = arith.negf %279 : vector<4x128xf32>
    %281 = math.exp %280 : vector<4x128xf32>
    %cst_62 = arith.constant 1.000000e+00 : f32
    %282 = vector.broadcast %cst_62 : f32 to vector<4x128xf32>
    %283 = arith.addf %282, %281 : vector<4x128xf32>
    %284 = arith.divf %282, %283 : vector<4x128xf32>
    %285 = math.tanh %279 : vector<4x128xf32>
    %286 = vector.extract_strided_slice %284 {offsets = [0, 0], sizes = [4, 32], strides = [1, 1]} : vector<4x128xf32> to vector<4x32xf32>
    %287 = vector.extract_strided_slice %284 {offsets = [0, 32], sizes = [4, 32], strides = [1, 1]} : vector<4x128xf32> to vector<4x32xf32>
    %288 = vector.extract_strided_slice %285 {offsets = [0, 64], sizes = [4, 32], strides = [1, 1]} : vector<4x128xf32> to vector<4x32xf32>
    %289 = vector.extract_strided_slice %284 {offsets = [0, 96], sizes = [4, 32], strides = [1, 1]} : vector<4x128xf32> to vector<4x32xf32>
    %290 = arith.mulf %287, %268 : vector<4x32xf32>
    %291 = arith.mulf %286, %288 : vector<4x32xf32>
    %292 = arith.addf %290, %291 : vector<4x32xf32>
    %293 = math.tanh %292 : vector<4x32xf32>
    %294 = arith.mulf %289, %293 : vector<4x32xf32>
    %295 = vector.extract_strided_slice %294 {offsets = [0, 0], sizes = [2, 32], strides = [1, 1]} : vector<4x32xf32> to vector<2x32xf32>
    %296 = vector.extract_strided_slice %294 {offsets = [2, 0], sizes = [2, 32], strides = [1, 1]} : vector<4x32xf32> to vector<2x32xf32>
    %297 = vector.extract_strided_slice %221 {offsets = [6, 0], sizes = [2, 128], strides = [1, 1]} : vector<16x128xf32> to vector<2x128xf32>
    %298 = vector.extract_strided_slice %222 {offsets = [8, 0], sizes = [2, 128], strides = [1, 1]} : vector<16x128xf32> to vector<2x128xf32>
    %299 = tpu.concatenate %297, %298 in 0 : vector<2x128xf32>, vector<2x128xf32> -> vector<4x128xf32>
    %cst_63 = arith.constant dense<0.000000e+00> : vector<2x128xf32>
    %300 = tpu.matmul %295, %218, %cst_63 {dimension_numbers = #tpu.dot_dimension_numbers<[1], [0], [0], [1], [0, 0, 1, 1], [], []>} : vector<2x32xf32>, vector<32x128xf32>, vector<2x128xf32> -> vector<2x128xf32>
    %cst_64 = arith.constant dense<0.000000e+00> : vector<2x128xf32>
    %301 = tpu.matmul %296, %220, %cst_64 {dimension_numbers = #tpu.dot_dimension_numbers<[1], [0], [0], [1], [0, 0, 1, 1], [], []>} : vector<2x32xf32>, vector<32x128xf32>, vector<2x128xf32> -> vector<2x128xf32>
    %302 = tpu.concatenate %300, %301 in 0 : vector<2x128xf32>, vector<2x128xf32> -> vector<4x128xf32>
    %303 = arith.addf %299, %302 : vector<4x128xf32>
    %304 = arith.negf %303 : vector<4x128xf32>
    %305 = math.exp %304 : vector<4x128xf32>
    %cst_65 = arith.constant 1.000000e+00 : f32
    %306 = vector.broadcast %cst_65 : f32 to vector<4x128xf32>
    %307 = arith.addf %306, %305 : vector<4x128xf32>
    %308 = arith.divf %306, %307 : vector<4x128xf32>
    %309 = math.tanh %303 : vector<4x128xf32>
    %310 = vector.extract_strided_slice %308 {offsets = [0, 0], sizes = [4, 32], strides = [1, 1]} : vector<4x128xf32> to vector<4x32xf32>
    %311 = vector.extract_strided_slice %308 {offsets = [0, 32], sizes = [4, 32], strides = [1, 1]} : vector<4x128xf32> to vector<4x32xf32>
    %312 = vector.extract_strided_slice %309 {offsets = [0, 64], sizes = [4, 32], strides = [1, 1]} : vector<4x128xf32> to vector<4x32xf32>
    %313 = vector.extract_strided_slice %308 {offsets = [0, 96], sizes = [4, 32], strides = [1, 1]} : vector<4x128xf32> to vector<4x32xf32>
    %314 = arith.mulf %311, %292 : vector<4x32xf32>
    %315 = arith.mulf %310, %312 : vector<4x32xf32>
    %316 = arith.addf %314, %315 : vector<4x32xf32>
    %317 = math.tanh %316 : vector<4x32xf32>
    %318 = arith.mulf %313, %317 : vector<4x32xf32>
    %319 = vector.extract_strided_slice %318 {offsets = [0, 0], sizes = [2, 32], strides = [1, 1]} : vector<4x32xf32> to vector<2x32xf32>
    %320 = vector.extract_strided_slice %318 {offsets = [2, 0], sizes = [2, 32], strides = [1, 1]} : vector<4x32xf32> to vector<2x32xf32>
    %321 = vector.extract_strided_slice %221 {offsets = [8, 0], sizes = [2, 128], strides = [1, 1]} : vector<16x128xf32> to vector<2x128xf32>
    %322 = vector.extract_strided_slice %222 {offsets = [6, 0], sizes = [2, 128], strides = [1, 1]} : vector<16x128xf32> to vector<2x128xf32>
    %323 = tpu.concatenate %321, %322 in 0 : vector<2x128xf32>, vector<2x128xf32> -> vector<4x128xf32>
    %cst_66 = arith.constant dense<0.000000e+00> : vector<2x128xf32>
    %324 = tpu.matmul %319, %218, %cst_66 {dimension_numbers = #tpu.dot_dimension_numbers<[1], [0], [0], [1], [0, 0, 1, 1], [], []>} : vector<2x32xf32>, vector<32x128xf32>, vector<2x128xf32> -> vector<2x128xf32>
    %cst_67 = arith.constant dense<0.000000e+00> : vector<2x128xf32>
    %325 = tpu.matmul %320, %220, %cst_67 {dimension_numbers = #tpu.dot_dimension_numbers<[1], [0], [0], [1], [0, 0, 1, 1], [], []>} : vector<2x32xf32>, vector<32x128xf32>, vector<2x128xf32> -> vector<2x128xf32>
    %326 = tpu.concatenate %324, %325 in 0 : vector<2x128xf32>, vector<2x128xf32> -> vector<4x128xf32>
    %327 = arith.addf %323, %326 : vector<4x128xf32>
    %328 = arith.negf %327 : vector<4x128xf32>
    %329 = math.exp %328 : vector<4x128xf32>
    %cst_68 = arith.constant 1.000000e+00 : f32
    %330 = vector.broadcast %cst_68 : f32 to vector<4x128xf32>
    %331 = arith.addf %330, %329 : vector<4x128xf32>
    %332 = arith.divf %330, %331 : vector<4x128xf32>
    %333 = math.tanh %327 : vector<4x128xf32>
    %334 = vector.extract_strided_slice %332 {offsets = [0, 0], sizes = [4, 32], strides = [1, 1]} : vector<4x128xf32> to vector<4x32xf32>
    %335 = vector.extract_strided_slice %332 {offsets = [0, 32], sizes = [4, 32], strides = [1, 1]} : vector<4x128xf32> to vector<4x32xf32>
    %336 = vector.extract_strided_slice %333 {offsets = [0, 64], sizes = [4, 32], strides = [1, 1]} : vector<4x128xf32> to vector<4x32xf32>
    %337 = vector.extract_strided_slice %332 {offsets = [0, 96], sizes = [4, 32], strides = [1, 1]} : vector<4x128xf32> to vector<4x32xf32>
    %338 = arith.mulf %335, %316 : vector<4x32xf32>
    %339 = arith.mulf %334, %336 : vector<4x32xf32>
    %340 = arith.addf %338, %339 : vector<4x32xf32>
    %341 = math.tanh %340 : vector<4x32xf32>
    %342 = arith.mulf %337, %341 : vector<4x32xf32>
    %343 = vector.extract_strided_slice %342 {offsets = [0, 0], sizes = [2, 32], strides = [1, 1]} : vector<4x32xf32> to vector<2x32xf32>
    %344 = vector.extract_strided_slice %342 {offsets = [2, 0], sizes = [2, 32], strides = [1, 1]} : vector<4x32xf32> to vector<2x32xf32>
    %345 = vector.extract_strided_slice %221 {offsets = [10, 0], sizes = [2, 128], strides = [1, 1]} : vector<16x128xf32> to vector<2x128xf32>
    %346 = vector.extract_strided_slice %222 {offsets = [4, 0], sizes = [2, 128], strides = [1, 1]} : vector<16x128xf32> to vector<2x128xf32>
    %347 = tpu.concatenate %345, %346 in 0 : vector<2x128xf32>, vector<2x128xf32> -> vector<4x128xf32>
    %cst_69 = arith.constant dense<0.000000e+00> : vector<2x128xf32>
    %348 = tpu.matmul %343, %218, %cst_69 {dimension_numbers = #tpu.dot_dimension_numbers<[1], [0], [0], [1], [0, 0, 1, 1], [], []>} : vector<2x32xf32>, vector<32x128xf32>, vector<2x128xf32> -> vector<2x128xf32>
    %cst_70 = arith.constant dense<0.000000e+00> : vector<2x128xf32>
    %349 = tpu.matmul %344, %220, %cst_70 {dimension_numbers = #tpu.dot_dimension_numbers<[1], [0], [0], [1], [0, 0, 1, 1], [], []>} : vector<2x32xf32>, vector<32x128xf32>, vector<2x128xf32> -> vector<2x128xf32>
    %350 = tpu.concatenate %348, %349 in 0 : vector<2x128xf32>, vector<2x128xf32> -> vector<4x128xf32>
    %351 = arith.addf %347, %350 : vector<4x128xf32>
    %352 = arith.negf %351 : vector<4x128xf32>
    %353 = math.exp %352 : vector<4x128xf32>
    %cst_71 = arith.constant 1.000000e+00 : f32
    %354 = vector.broadcast %cst_71 : f32 to vector<4x128xf32>
    %355 = arith.addf %354, %353 : vector<4x128xf32>
    %356 = arith.divf %354, %355 : vector<4x128xf32>
    %357 = math.tanh %351 : vector<4x128xf32>
    %358 = vector.extract_strided_slice %356 {offsets = [0, 0], sizes = [4, 32], strides = [1, 1]} : vector<4x128xf32> to vector<4x32xf32>
    %359 = vector.extract_strided_slice %356 {offsets = [0, 32], sizes = [4, 32], strides = [1, 1]} : vector<4x128xf32> to vector<4x32xf32>
    %360 = vector.extract_strided_slice %357 {offsets = [0, 64], sizes = [4, 32], strides = [1, 1]} : vector<4x128xf32> to vector<4x32xf32>
    %361 = vector.extract_strided_slice %356 {offsets = [0, 96], sizes = [4, 32], strides = [1, 1]} : vector<4x128xf32> to vector<4x32xf32>
    %362 = arith.mulf %359, %340 : vector<4x32xf32>
    %363 = arith.mulf %358, %360 : vector<4x32xf32>
    %364 = arith.addf %362, %363 : vector<4x32xf32>
    %365 = math.tanh %364 : vector<4x32xf32>
    %366 = arith.mulf %361, %365 : vector<4x32xf32>
    %367 = vector.extract_strided_slice %366 {offsets = [0, 0], sizes = [2, 32], strides = [1, 1]} : vector<4x32xf32> to vector<2x32xf32>
    %368 = vector.extract_strided_slice %366 {offsets = [2, 0], sizes = [2, 32], strides = [1, 1]} : vector<4x32xf32> to vector<2x32xf32>
    %369 = vector.extract_strided_slice %221 {offsets = [12, 0], sizes = [2, 128], strides = [1, 1]} : vector<16x128xf32> to vector<2x128xf32>
    %370 = vector.extract_strided_slice %222 {offsets = [2, 0], sizes = [2, 128], strides = [1, 1]} : vector<16x128xf32> to vector<2x128xf32>
    %371 = tpu.concatenate %369, %370 in 0 : vector<2x128xf32>, vector<2x128xf32> -> vector<4x128xf32>
    %cst_72 = arith.constant dense<0.000000e+00> : vector<2x128xf32>
    %372 = tpu.matmul %367, %218, %cst_72 {dimension_numbers = #tpu.dot_dimension_numbers<[1], [0], [0], [1], [0, 0, 1, 1], [], []>} : vector<2x32xf32>, vector<32x128xf32>, vector<2x128xf32> -> vector<2x128xf32>
    %cst_73 = arith.constant dense<0.000000e+00> : vector<2x128xf32>
    %373 = tpu.matmul %368, %220, %cst_73 {dimension_numbers = #tpu.dot_dimension_numbers<[1], [0], [0], [1], [0, 0, 1, 1], [], []>} : vector<2x32xf32>, vector<32x128xf32>, vector<2x128xf32> -> vector<2x128xf32>
    %374 = tpu.concatenate %372, %373 in 0 : vector<2x128xf32>, vector<2x128xf32> -> vector<4x128xf32>
    %375 = arith.addf %371, %374 : vector<4x128xf32>
    %376 = arith.negf %375 : vector<4x128xf32>
    %377 = math.exp %376 : vector<4x128xf32>
    %cst_74 = arith.constant 1.000000e+00 : f32
    %378 = vector.broadcast %cst_74 : f32 to vector<4x128xf32>
    %379 = arith.addf %378, %377 : vector<4x128xf32>
    %380 = arith.divf %378, %379 : vector<4x128xf32>
    %381 = math.tanh %375 : vector<4x128xf32>
    %382 = vector.extract_strided_slice %380 {offsets = [0, 0], sizes = [4, 32], strides = [1, 1]} : vector<4x128xf32> to vector<4x32xf32>
    %383 = vector.extract_strided_slice %380 {offsets = [0, 32], sizes = [4, 32], strides = [1, 1]} : vector<4x128xf32> to vector<4x32xf32>
    %384 = vector.extract_strided_slice %381 {offsets = [0, 64], sizes = [4, 32], strides = [1, 1]} : vector<4x128xf32> to vector<4x32xf32>
    %385 = vector.extract_strided_slice %380 {offsets = [0, 96], sizes = [4, 32], strides = [1, 1]} : vector<4x128xf32> to vector<4x32xf32>
    %386 = arith.mulf %383, %364 : vector<4x32xf32>
    %387 = arith.mulf %382, %384 : vector<4x32xf32>
    %388 = arith.addf %386, %387 : vector<4x32xf32>
    %389 = math.tanh %388 : vector<4x32xf32>
    %390 = arith.mulf %385, %389 : vector<4x32xf32>
    %391 = vector.extract_strided_slice %390 {offsets = [0, 0], sizes = [2, 32], strides = [1, 1]} : vector<4x32xf32> to vector<2x32xf32>
    %392 = vector.extract_strided_slice %390 {offsets = [2, 0], sizes = [2, 32], strides = [1, 1]} : vector<4x32xf32> to vector<2x32xf32>
    %393 = vector.extract_strided_slice %221 {offsets = [14, 0], sizes = [2, 128], strides = [1, 1]} : vector<16x128xf32> to vector<2x128xf32>
    %394 = vector.extract_strided_slice %222 {offsets = [0, 0], sizes = [2, 128], strides = [1, 1]} : vector<16x128xf32> to vector<2x128xf32>
    %395 = tpu.concatenate %393, %394 in 0 : vector<2x128xf32>, vector<2x128xf32> -> vector<4x128xf32>
    %cst_75 = arith.constant dense<0.000000e+00> : vector<2x128xf32>
    %396 = tpu.matmul %391, %218, %cst_75 {dimension_numbers = #tpu.dot_dimension_numbers<[1], [0], [0], [1], [0, 0, 1, 1], [], []>} : vector<2x32xf32>, vector<32x128xf32>, vector<2x128xf32> -> vector<2x128xf32>
    %cst_76 = arith.constant dense<0.000000e+00> : vector<2x128xf32>
    %397 = tpu.matmul %392, %220, %cst_76 {dimension_numbers = #tpu.dot_dimension_numbers<[1], [0], [0], [1], [0, 0, 1, 1], [], []>} : vector<2x32xf32>, vector<32x128xf32>, vector<2x128xf32> -> vector<2x128xf32>
    %398 = tpu.concatenate %396, %397 in 0 : vector<2x128xf32>, vector<2x128xf32> -> vector<4x128xf32>
    %399 = arith.addf %395, %398 : vector<4x128xf32>
    %400 = arith.negf %399 : vector<4x128xf32>
    %401 = math.exp %400 : vector<4x128xf32>
    %cst_77 = arith.constant 1.000000e+00 : f32
    %402 = vector.broadcast %cst_77 : f32 to vector<4x128xf32>
    %403 = arith.addf %402, %401 : vector<4x128xf32>
    %404 = arith.divf %402, %403 : vector<4x128xf32>
    %405 = math.tanh %399 : vector<4x128xf32>
    %406 = vector.extract_strided_slice %404 {offsets = [0, 0], sizes = [4, 32], strides = [1, 1]} : vector<4x128xf32> to vector<4x32xf32>
    %407 = vector.extract_strided_slice %404 {offsets = [0, 32], sizes = [4, 32], strides = [1, 1]} : vector<4x128xf32> to vector<4x32xf32>
    %408 = vector.extract_strided_slice %405 {offsets = [0, 64], sizes = [4, 32], strides = [1, 1]} : vector<4x128xf32> to vector<4x32xf32>
    %409 = vector.extract_strided_slice %404 {offsets = [0, 96], sizes = [4, 32], strides = [1, 1]} : vector<4x128xf32> to vector<4x32xf32>
    %410 = arith.mulf %407, %388 : vector<4x32xf32>
    %411 = arith.mulf %406, %408 : vector<4x32xf32>
    %412 = arith.addf %410, %411 : vector<4x32xf32>
    %413 = math.tanh %412 : vector<4x32xf32>
    %414 = arith.mulf %409, %413 : vector<4x32xf32>
    %415 = vector.extract_strided_slice %414 {offsets = [0, 0], sizes = [2, 32], strides = [1, 1]} : vector<4x32xf32> to vector<2x32xf32>
    %416 = vector.extract_strided_slice %414 {offsets = [2, 0], sizes = [2, 32], strides = [1, 1]} : vector<4x32xf32> to vector<2x32xf32>
    %417 = tpu.concatenate %247, %271, %295, %319, %343, %367, %391, %415 in 0 : vector<2x32xf32>, vector<2x32xf32>, vector<2x32xf32>, vector<2x32xf32>, vector<2x32xf32>, vector<2x32xf32>, vector<2x32xf32>, vector<2x32xf32> -> vector<16x32xf32>
    %418 = tpu.concatenate %416, %392, %368, %344, %320, %296, %272, %248 in 0 : vector<2x32xf32>, vector<2x32xf32>, vector<2x32xf32>, vector<2x32xf32>, vector<2x32xf32>, vector<2x32xf32>, vector<2x32xf32>, vector<2x32xf32> -> vector<16x32xf32>
    %c0_78 = arith.constant 0 : index
    %c0_79 = arith.constant 0 : index
    %419 = vector.load %arg6[%c0_78, %c0_79] : memref<64x128xf32, #tpu.memory_space<vmem>>, vector<64x128xf32>
    %420 = vector.extract_strided_slice %419 {offsets = [0, 0], sizes = [32, 128], strides = [1, 1]} : vector<64x128xf32> to vector<32x128xf32>
    %cst_80 = arith.constant dense<0.000000e+00> : vector<16x128xf32>
    %421 = tpu.matmul %417, %420, %cst_80 {dimension_numbers = #tpu.dot_dimension_numbers<[1], [0], [0], [1], [0, 0, 1, 1], [], []>} : vector<16x32xf32>, vector<32x128xf32>, vector<16x128xf32> -> vector<16x128xf32>
    %422 = vector.extract_strided_slice %419 {offsets = [32, 0], sizes = [32, 128], strides = [1, 1]} : vector<64x128xf32> to vector<32x128xf32>
    %cst_81 = arith.constant dense<0.000000e+00> : vector<16x128xf32>
    %423 = tpu.matmul %418, %422, %cst_81 {dimension_numbers = #tpu.dot_dimension_numbers<[1], [0], [0], [1], [0, 0, 1, 1], [], []>} : vector<16x32xf32>, vector<32x128xf32>, vector<16x128xf32> -> vector<16x128xf32>
    %424 = arith.addf %421, %423 : vector<16x128xf32>
    %c0_82 = arith.constant 0 : index
    %c0_83 = arith.constant 0 : index
    %425 = vector.load %arg7[%c0_82, %c0_83] : memref<1x128xf32, #tpu.memory_space<vmem>>, vector<1x128xf32>
    %426 = vector.broadcast %425 : vector<1x128xf32> to vector<16x128xf32>
    %427 = arith.addf %424, %426 : vector<16x128xf32>
    %c0_84 = arith.constant 0 : index
    %c0_85 = arith.constant 0 : index
    %428 = vector.load %arg8[%c0_84, %c0_85] : memref<16x128xf32, #tpu.memory_space<vmem>>, vector<16x128xf32>
    tpu.vector_store %arg8[%c0_84, %c0_85], %427 {strides = array<i32>} : memref<16x128xf32, #tpu.memory_space<vmem>>, vector<16x128xf32>,
    return
  }
}

</mosaic_0001>

<bundles_post_ra>
// kernel: decoder_rnn_forward.1
= control target key start
LH: loop header
LB: loop body
LE: loop exit
PB: predicated region body
PF: predicated region fallthrough
CT: control target
= control target key end

     0   :  { %v4515_v3 = vmov 0.0   ;;  %v4516_v4 = vmov 0.0|0.0   ;;  %vm4517_vm0 = vmmov 0   ;;  %vm51_vm1 = vcmask 261120   ;;  %s4519_s19 = smov 32   ;;  %s5255_s1 = inlined_call_operand.vmem [shape: f32[32,256], index: 1, kind: input, shape index: {}]   ;;  %s5256_s3 = inlined_call_operand.vmem [shape: f32[2,2,32,128], index: 3, kind: input, shape index: {}]   ;;  %s5257_s0 = inlined_call_operand.vmem [shape: f32[16,32], index: 0, kind: input, shape index: {}]   ;;  %s5258_s4 = inlined_call_operand.vmem [shape: f32[1,256], index: 4, kind: input, shape index: {}]   ;;  %s5259_s2 = inlined_call_operand.vmem [shape: f32[64,256], index: 2, kind: input, shape index: {}]   ;;  %s5260_s5 = inlined_call_operand.vmem [shape: f32[1,256], index: 5, kind: input, shape index: {}]   ;;  %s5261_s6 = inlined_call_operand.vmem [shape: f32[64,128], index: 6, kind: input, shape index: {}]   ;;  %s5262_s7 = inlined_call_operand.vmem [shape: f32[1,128], index: 7, kind: input, shape index: {}]   ;;  %s5263_s8 = inlined_call_operand.vmem [shape: f32[16,128], index: 8, kind: output, shape index: {}]  }
   0x1   :  { %v32_v0 = vld [vmem:[%s5255_s1 + $0x8] sm:$0xff]  ;;  %v34_v1 = vld [vmem:[%s5255_s1 + $0x18] sm:$0xff]  ;;  %v31_v2 = vld [vmem:[%s5255_s1] sm:$0xff]  ;;  %122 = vmatprep.mubr.f32.mxu0 %v4515_v3  ;;  %4152 = vmatprep.subr.bf16.mxu1 %v4516_v4  ;;  %v41_v28 = vlaneseq  ;;  %vm147_vm2 = vcmask 1041408   ;;  %vm1619_vm3 = vcmask 1043456   ;;  %vm1621_vm4 = vcmask 1045504  }
   0x2   :  { %v4144_v5 = vpack.c.bf16 %v34_v1, %v32_v0  ;;  %v33_v6 = vld [vmem:[%s5255_s1 + $0x10] sm:$0xff]  ;;  %v36_v7 = vld [vmem:[%s5255_s1 + $0x28] sm:$0xff]  ;;  %v38_v8 = vld [vmem:[%s5255_s1 + $0x38] sm:$0xff]  ;;  %3778 = vmatprep.mubr.msk.f32.mxu1 %vm4517_vm0, %v4515_v3 }
   0x3   :  { %v4146_v9 = vpack.c.bf16 %v33_v6, %v31_v2  ;;  %v4148_v10 = vpack.c.bf16 %v38_v8, %v36_v7  ;;  %v35_v11 = vld [vmem:[%s5255_s1 + $0x20] sm:$0xff]  ;;  %v37_v12 = vld [vmem:[%s5255_s1 + $0x30] sm:$0xff]  ;;  %v136_v16 = vld [vmem:[%s5256_s3 + $0x8] sm:$0xff]  ;;  %v4659_v29 = vshrl.u32 %v41_v28, 7 }
   0x4   :  { %4145 = vmatprep.subr.bf16.mxu0 %v4144_v5  ;;  %v135_v13 = vld [vmem:[%s5256_s3] sm:$0xff]  ;;  %v4150_v14 = vpack.c.bf16 %v37_v12, %v35_v11  ;;  %v3534_v17 = vld [vmem:[%s5256_s3 + $0x28] sm:$0xff]  ;;  %v137_v19 = vld [vmem:[%s5256_s3 + $0x10] sm:$0xff] }
   0x5   :  { %4147 = vmatpush1.bf16.msra.mxu0 %v4146_v9  ;;  %v3533_v15 = vld [vmem:[%s5256_s3 + $0x20] sm:$0xff]  ;;  %v4605_v18 = vpack.c.bf16 %v136_v16, %v135_v13  ;;  %v138_v20 = vld [vmem:[%s5256_s3 + $0x18] sm:$0xff]  ;;  %v3535_v24 = vld [vmem:[%s5256_s3 + $0x30] sm:$0xff]  ;;  %v43_v30 = vsub.s32 0, %v4659_v29  ;;  %v47_v32 = vsub.s32 1, %v4659_v29 }
   0x6   :  { %4149 = vmatprep.subr.bf16.mxu0 %v4148_v10  ;;  %v4614_v21 = vpack.c.bf16 %v138_v20, %v137_v19  ;;  %v29_v22 = vld [vmem:[%s5257_s0] sm:$0xff]  ;;  %v4619_v23 = vpack.c.bf16 %v3534_v17, %v3533_v15  ;;  %v3536_v25 = vld [vmem:[%s5256_s3 + $0x38] sm:$0xff]  ;;  %v30_v26 = vld [vmem:[%s5257_s0 + $0x8] sm:$0xff] }
   0x7   :  { %4154 = vmatpush3.bf16.msra.mxu1 %v4605_v18  ;;  %v4636_v27 = vpack.c.bf16 %v3536_v25, %v3535_v24  ;;  %v39_v31 = vld [vmem:[%s5258_s4] sm:$0x3]  ;;  %s4518_s4 = smov 64  }
   0x8   :  { %4155 = vmatprep.subr.bf16.mxu1 %v4516_v4  ;;  %v44_v33 = vrot.slane %v39_v31, %v43_v30  ;;  %v48_v34 = vrot.slane %v39_v31, %v47_v32 }
   0x9   :  { %4151 = vmatpush1.bf16.msra.mxu0 %v4150_v14 }
   0xa   :  { %4158 = vmatprep.subr.bf16.mxu0 %v4516_v4 }
   0xb   :  { %4157 = vmatpush3.bf16.msra.mxu1 %v4614_v21 }
   0xc   :  { %3531 = vmatmul.mubr.msk.f32.vlgmr.msra.gmra.mrb[0].mxu0 %vm51_vm1, %v29_v22  ;;  %4164 = vmatprep.subr.bf16.mxu1 %v4516_v4 }
   0xd   :  { %4160 = vmatpush3.bf16.msra.mxu0 %v4619_v23  ;;  %128 = vmatprep.mubr.f32.mxu0 %v4515_v3 }
   0xe   :  { %4161 = vmatprep.subr.bf16.mxu0 %v4516_v4  ;;  %3779 = vmatmul.mubr.f32.vlgmr.msra.gmra.mrb[0].mxu1 %v4515_v3 }
   0xf   :  { %4166 = vmatpush3.bf16.msra.mxu1 %v4605_v18  ;;  %3800 = vmatprep.mubr.msk.f32.mxu1 %vm4517_vm0, %v4515_v3 }
  0x10   :  { %3532 = vmatmul.mubr.msk.f32.gmra.mrb[2].mxu0 %vm51_vm1, %v30_v26  ;;  %4167 = vmatprep.subr.bf16.mxu1 %v4516_v4 }
  0x11   :  { %4163 = vmatpush3.bf16.msra.mxu0 %v4636_v27  ;;  %3789 = vmatprep.mubr.msk.f32.mxu0 %vm4517_vm0, %v4515_v3 }
  0x12   :  { %4170 = vmatprep.subr.bf16.mxu0 %v4516_v4 }
  0x13   :  { %4169 = vmatpush3.bf16.msra.mxu1 %v4614_v21 }
  0x14   :  { %3790 = vmatmul.mubr.f32.vlgmr.msra.gmra.mrb[4].mxu0 %v4515_v3  ;;  %4176 = vmatprep.subr.bf16.mxu1 %v4516_v4 }
  0x15   :  { %4172 = vmatpush3.bf16.msra.mxu0 %v4619_v23  ;;  %3811 = vmatprep.mubr.msk.f32.mxu0 %vm4517_vm0, %v4515_v3 }
  0x16   :  { %4173 = vmatprep.subr.bf16.mxu0 %v4516_v4 }
  0x19   :  { %4175 = vmatpush3.bf16.msra.mxu0 %v4636_v27 }
  0x1a   :  { %4182 = vmatprep.subr.bf16.mxu0 %v4516_v4 }
  0xdf   :  { %v124_v35 = vpop.f32.mrb[0].mxu0 }
  0xe0   :  { %v125_v36 = vadd.f32 %v124_v35, %v44_v33  ;;  %v126_v37 = vpop.f32.mrb[1].mxu0 }
  0xe1   :  { %v127_v38 = vadd.f32 %v126_v37, %v48_v34  ;;  %v218_v39 = vpop.f32.mrb[0].mxu1 }
  0xe2   :  { %v3780_v42 = vpop.f32.mrb[1].mxu1  ;;  %v322_v43 = vrot.slane %v125_v36, 2  ;;  %v506_v44 = vrot.slane %v125_v36, 4  ;;  %v688_v47 = vrot.slane %v125_v36, 6 }
  0xe3   :  { %v873_v40 = vrot.slane %v127_v38, 4  ;;  %v130_v41 = vpop.f32.mrb[2].mxu0  ;;  %v1058_v48 = vrot.slane %v127_v38, 2  ;;  %v1424_v49 = vrot.slane %v127_v38, 6 }
  0xe4   :  { %v131_v45 = vadd.f32 %v130_v41, %v44_v33  ;;  %v132_v46 = vpop.f32.mrb[3].mxu0 }
  0xe5   :  { %v133_v50 = vadd.f32 %v132_v46, %v48_v34 }
  0xe6   :  { %v1056_v51 = vrot.slane %v131_v45, 2  ;;  %v1240_v52 = vrot.slane %v131_v45, 4  ;;  %v1422_v53 = vrot.slane %v131_v45, 6  ;;  %v4671_v54 = vsel %vm147_vm2, %v131_v45, %v873_v40 }
  0xe7   :  { %v324_v55 = vrot.slane %v133_v50, 2  ;;  %v690_v56 = vrot.slane %v133_v50, 6  ;;  %v288_v57 = vpop.f32.mrb[4].mxu0  ;;  %v145_v58 = vrot.slane %v133_v50, 4  ;;  %v4674_v59 = vsel %vm147_vm2, %v506_v44, %v133_v50 }
  0xe8   :  { %v293_v60 = vrot.slane %v288_v57, 6  ;;  %v3791_v61 = vpop.f32.mrb[5].mxu0  ;;  %v4677_v62 = vsel %vm147_vm2, %v1056_v51, %v1058_v48  ;;  %v4680_v63 = vsel %vm147_vm2, %v1240_v52, %v127_v38  ;;  %v4683_v0 = vsel %vm147_vm2, %v1422_v53, %v1424_v49 }
  0xe9   :  { %v148_v1 = vsel %vm147_vm2, %v125_v36, %v145_v58  ;;  %v326_v2 = vsel %vm147_vm2, %v322_v43, %v324_v55  ;;  %v4688_v5 = vsel %vm147_vm2, %v688_v47, %v690_v56 }
  0xea   :  { %v295_v6 = vsel %vm147_vm2, %v218_v39, %v293_v60 }
  0xeb   :  { %v296_v7 = vadd.f32 %v295_v6, %v148_v1 }
  0xed   :  { %4387 = vtanh.f32 %v296_v7  ;;  %v3537_v9 = vmul.f32 -1.442695, %v296_v7 }
  0xef   :  { %4389 = vpow2.f32 %v3537_v9 }
  0xf7   :  { %v4388_v8 = vpop.eup %4387 }
  0xf8   :  { %306 = vrot.lane.b32.xlu0 %v4388_v8, %s4518_s4 }
  0xf9   :  { %v4390_v10 = vpop.eup %4389 }
  0xfa   :  { %v300_v11 = vadd.f32 1.0, %v4390_v10 }
  0xfc   :  { %4391 = vrcp.f32 %v300_v11 }
 0x106   :  { %v4392_v12 = vpop.eup %4391 }
 0x107   :  { %v304_v15 = vmul.f32 0.0, %v4392_v12 }
 0x16a   :  { %v307_v13 = vpop.permute.xlu0 %306 }
 0x16b   :  { %v309_v14 = vmul.f32 %v4392_v12, %v307_v13 }
 0x16d   :  { %311 = vrot.lane.b32.xlu0 %v309_v14, %s4519_s19 }
 0x1df   :  { %v312_v16 = vpop.permute.xlu0 %311 }
 0x1e0   :  { %v314_v17 = vadd.f32 %v312_v16, %v304_v15 }
 0x1e2   :  { %4393 = vtanh.f32 %v314_v17 }
 0x1ec   :  { %v4394_v19 = vpop.eup %4393 }
 0x1ed   :  { %317 = vrot.lane.b32.xlu1 %v4394_v19, %s4518_s4 }
 0x25f   :  { %v318_v20 = vpop.permute.xlu1 %317 }
 0x260   :  { %v4694_v22 = vmul.f32 %v4392_v12, %v318_v20 }
 0x262   :  { %328 = vrot.lane.b32.xlu0 %v4694_v22, %s4519_s19  ;;  %v402_v24 = vrot.slane %v4694_v22, 2 }
 0x264   :  { %403 = vrot.lane.b32.xlu1 %v402_v24, %s4519_s19 }
 0x2d4   :  { %v329_v25 = vpop.permute.xlu0 %328 }
 0x2d5   :  { %3801 = vmatmul.mubr.msk.f32.vlgmr.msra.gmra.mrb[2].mxu1 %vm51_vm1, %v329_v25 }
 0x2d6   :  { %v404_v26 = vpop.permute.xlu1 %403  ;;  %4178 = vmatpush3.bf16.msra.mxu1 %v4605_v18  ;;  %3822 = vmatprep.mubr.msk.f32.mxu1 %vm4517_vm0, %v4515_v3 }
 0x2d7   :  { %3812 = vmatmul.mubr.msk.f32.vlgmr.msra.gmra.mrb[6].mxu0 %vm51_vm1, %v404_v26  ;;  %4179 = vmatprep.subr.bf16.mxu1 %v4516_v4 }
 0x2d8   :  { %4184 = vmatpush3.bf16.msra.mxu0 %v4619_v23  ;;  %3833 = vmatprep.mubr.msk.f32.mxu0 %vm4517_vm0, %v4515_v3 }
 0x2d9   :  { %4185 = vmatprep.subr.bf16.mxu0 %v4516_v4 }
 0x2da   :  { %4181 = vmatpush3.bf16.msra.mxu1 %v4614_v21 }
 0x2db   :  { %4188 = vmatprep.subr.bf16.mxu1 %v4516_v4 }
 0x2dc   :  { %4187 = vmatpush3.bf16.msra.mxu0 %v4636_v27 }
 0x2dd   :  { %4194 = vmatprep.subr.bf16.mxu0 %v4516_v4 }
 0x3a8   :  { %v398_v28 = vpop.f32.mrb[2].mxu1 }
 0x3a9   :  { %v3802_v31 = vpop.f32.mrb[3].mxu1 }
 0x3aa   :  { %v473_v33 = vpop.f32.mrb[6].mxu0 }
 0x3ab   :  { %v478_v34 = vrot.slane %v473_v33, 6  ;;  %v3813_v35 = vpop.f32.mrb[7].mxu0 }
 0x3ad   :  { %v480_v36 = vsel %vm147_vm2, %v398_v28, %v478_v34 }
 0x3ae   :  { %v481_v37 = vadd.f32 %v480_v36, %v326_v2 }
 0x3b0   :  { %4395 = vtanh.f32 %v481_v37  ;;  %v3540_v39 = vmul.f32 -1.442695, %v481_v37 }
 0x3b2   :  { %4397 = vpow2.f32 %v3540_v39 }
 0x3ba   :  { %v4396_v38 = vpop.eup %4395 }
 0x3bb   :  { %491 = vrot.lane.b32.xlu1 %v4396_v38, %s4518_s4 }
 0x3bc   :  { %v4398_v40 = vpop.eup %4397 }
 0x3bd   :  { %v485_v41 = vadd.f32 1.0, %v4398_v40 }
 0x3bf   :  { %4399 = vrcp.f32 %v485_v41 }
 0x3c9   :  { %v4400_v42 = vpop.eup %4399 }
 0x3ca   :  { %v489_v45 = vmul.f32 %v4400_v42, %v314_v17 }
 0x42d   :  { %v492_v43 = vpop.permute.xlu1 %491 }
 0x42e   :  { %v494_v44 = vmul.f32 %v4400_v42, %v492_v43 }
 0x430   :  { %496 = vrot.lane.b32.xlu0 %v494_v44, %s4519_s19 }
 0x4a2   :  { %v497_v46 = vpop.permute.xlu0 %496 }
 0x4a3   :  { %v499_v47 = vadd.f32 %v497_v46, %v489_v45 }
 0x4a5   :  { %4401 = vtanh.f32 %v499_v47 }
 0x4af   :  { %v4402_v48 = vpop.eup %4401 }
 0x4b0   :  { %502 = vrot.lane.b32.xlu1 %v4402_v48, %s4518_s4 }
 0x522   :  { %v503_v49 = vpop.permute.xlu1 %502 }
 0x523   :  { %v4718_v50 = vmul.f32 %v4400_v42, %v503_v49 }
 0x525   :  { %510 = vrot.lane.b32.xlu1 %v4718_v50, %s4519_s19  ;;  %v584_v51 = vrot.slane %v4718_v50, 2 }
 0x527   :  { %585 = vrot.lane.b32.xlu0 %v584_v51, %s4519_s19 }
 0x597   :  { %v511_v52 = vpop.permute.xlu1 %510 }
 0x598   :  { %3823 = vmatmul.mubr.msk.f32.vlgmr.msra.gmra.mrb[4].mxu1 %vm51_vm1, %v511_v52 }
 0x599   :  { %v586_v53 = vpop.permute.xlu0 %585  ;;  %4190 = vmatpush3.bf16.msra.mxu1 %v4605_v18  ;;  %3844 = vmatprep.mubr.msk.f32.mxu1 %vm4517_vm0, %v4515_v3 }
 0x59a   :  { %3834 = vmatmul.mubr.msk.f32.vlgmr.msra.gmra.mrb[8].mxu0 %vm51_vm1, %v586_v53  ;;  %4191 = vmatprep.subr.bf16.mxu1 %v4516_v4 }
 0x59b   :  { %4196 = vmatpush3.bf16.msra.mxu0 %v4619_v23  ;;  %3855 = vmatprep.mubr.msk.f32.mxu0 %vm4517_vm0, %v4515_v3 }
 0x59c   :  { %4197 = vmatprep.subr.bf16.mxu0 %v4516_v4 }
 0x59d   :  { %4193 = vmatpush3.bf16.msra.mxu1 %v4614_v21 }
 0x59e   :  { %4200 = vmatprep.subr.bf16.mxu1 %v4516_v4 }
 0x59f   :  { %4199 = vmatpush3.bf16.msra.mxu0 %v4636_v27 }
 0x5a0   :  { %4206 = vmatprep.subr.bf16.mxu0 %v4516_v4 }
 0x66b   :  { %v580_v55 = vpop.f32.mrb[4].mxu1 }
 0x66c   :  { %v3824_v56 = vpop.f32.mrb[5].mxu1 }
 0x66d   :  { %v655_v57 = vpop.f32.mrb[8].mxu0 }
 0x66e   :  { %v660_v58 = vrot.slane %v655_v57, 6  ;;  %v3835_v60 = vpop.f32.mrb[9].mxu0 }
 0x670   :  { %v662_v61 = vsel %vm147_vm2, %v580_v55, %v660_v58 }
 0x671   :  { %v663_v1 = vadd.f32 %v662_v61, %v4674_v59 }
 0x673   :  { %4403 = vtanh.f32 %v663_v1  ;;  %v3543_v6 = vmul.f32 -1.442695, %v663_v1 }
 0x675   :  { %4405 = vpow2.f32 %v3543_v6 }
 0x67d   :  { %v4404_v2 = vpop.eup %4403 }
 0x67e   :  { %673 = vrot.lane.b32.xlu0 %v4404_v2, %s4518_s4 }
 0x67f   :  { %v4406_v7 = vpop.eup %4405 }
 0x680   :  { %v667_v8 = vadd.f32 1.0, %v4406_v7 }
 0x682   :  { %4407 = vrcp.f32 %v667_v8 }
 0x68c   :  { %v4408_v9 = vpop.eup %4407 }
 0x68d   :  { %v671_v12 = vmul.f32 %v4408_v9, %v499_v47 }
 0x6f0   :  { %v674_v10 = vpop.permute.xlu0 %673 }
 0x6f1   :  { %v676_v11 = vmul.f32 %v4408_v9, %v674_v10 }
 0x6f3   :  { %678 = vrot.lane.b32.xlu1 %v676_v11, %s4519_s19 }
 0x765   :  { %v679_v13 = vpop.permute.xlu1 %678 }
 0x766   :  { %v681_v14 = vadd.f32 %v679_v13, %v671_v12 }
 0x768   :  { %4409 = vtanh.f32 %v681_v14 }
 0x772   :  { %v4410_v15 = vpop.eup %4409 }
 0x773   :  { %684 = vrot.lane.b32.xlu0 %v4410_v15, %s4518_s4 }
 0x7e5   :  { %v685_v59 = vpop.permute.xlu0 %684 }
 0x7e6   :  { %v4743_v16 = vmul.f32 %v4408_v9, %v685_v59 }
 0x7e8   :  { %694 = vrot.lane.b32.xlu0 %v4743_v16, %s4519_s19  ;;  %v768_v17 = vrot.slane %v4743_v16, 2 }
 0x7ea   :  { %769 = vrot.lane.b32.xlu1 %v768_v17, %s4519_s19 }
 0x85a   :  { %v695_v19 = vpop.permute.xlu0 %694 }
 0x85b   :  { %3845 = vmatmul.mubr.msk.f32.vlgmr.msra.gmra.mrb[6].mxu1 %vm51_vm1, %v695_v19 }
 0x85c   :  { %v770_v20 = vpop.permute.xlu1 %769  ;;  %4202 = vmatpush3.bf16.msra.mxu1 %v4605_v18  ;;  %3866 = vmatprep.mubr.msk.f32.mxu1 %vm4517_vm0, %v4515_v3 }
 0x85d   :  { %3856 = vmatmul.mubr.msk.f32.vlgmr.msra.gmra.mrb[10].mxu0 %vm51_vm1, %v770_v20  ;;  %4203 = vmatprep.subr.bf16.mxu1 %v4516_v4 }
 0x85e   :  { %4208 = vmatpush3.bf16.msra.mxu0 %v4619_v23  ;;  %3877 = vmatprep.mubr.msk.f32.mxu0 %vm4517_vm0, %v4515_v3 }
 0x85f   :  { %4209 = vmatprep.subr.bf16.mxu0 %v4516_v4 }
 0x860   :  { %4205 = vmatpush3.bf16.msra.mxu1 %v4614_v21 }
 0x861   :  { %4212 = vmatprep.subr.bf16.mxu1 %v4516_v4 }
 0x862   :  { %4211 = vmatpush3.bf16.msra.mxu0 %v4636_v27 }
 0x863   :  { %4218 = vmatprep.subr.bf16.mxu0 %v4516_v4 }
 0x92e   :  { %v764_v24 = vpop.f32.mrb[6].mxu1 }
 0x92f   :  { %v3846_v25 = vpop.f32.mrb[7].mxu1 }
 0x930   :  { %v839_v26 = vpop.f32.mrb[10].mxu0 }
 0x931   :  { %v844_v28 = vrot.slane %v839_v26, 6  ;;  %v3857_v31 = vpop.f32.mrb[11].mxu0 }
 0x933   :  { %v846_v33 = vsel %vm147_vm2, %v764_v24, %v844_v28 }
 0x934   :  { %v847_v34 = vadd.f32 %v846_v33, %v4688_v5 }
 0x936   :  { %4411 = vtanh.f32 %v847_v34  ;;  %v3546_v36 = vmul.f32 -1.442695, %v847_v34 }
 0x938   :  { %4413 = vpow2.f32 %v3546_v36 }
 0x940   :  { %v4412_v35 = vpop.eup %4411 }
 0x941   :  { %857 = vrot.lane.b32.xlu1 %v4412_v35, %s4518_s4 }
 0x942   :  { %v4414_v37 = vpop.eup %4413 }
 0x943   :  { %v851_v38 = vadd.f32 1.0, %v4414_v37 }
 0x945   :  { %4415 = vrcp.f32 %v851_v38 }
 0x94f   :  { %v4416_v39 = vpop.eup %4415 }
 0x950   :  { %v855_v42 = vmul.f32 %v4416_v39, %v681_v14 }
 0x9b3   :  { %v858_v40 = vpop.permute.xlu1 %857 }
 0x9b4   :  { %v860_v41 = vmul.f32 %v4416_v39, %v858_v40 }
 0x9b6   :  { %862 = vrot.lane.b32.xlu0 %v860_v41, %s4519_s19 }
 0xa28   :  { %v863_v43 = vpop.permute.xlu0 %862 }
 0xa29   :  { %v865_v44 = vadd.f32 %v863_v43, %v855_v42 }
 0xa2b   :  { %4417 = vtanh.f32 %v865_v44 }
 0xa35   :  { %v4418_v45 = vpop.eup %4417 }
 0xa36   :  { %868 = vrot.lane.b32.xlu1 %v4418_v45, %s4518_s4 }
 0xaa8   :  { %v869_v5 = vpop.permute.xlu1 %868 }
 0xaa9   :  { %v871_v46 = vmul.f32 %v4416_v39, %v869_v5 }
 0xaab   :  { %v4768_v47 = vrot.slane %v871_v46, 2  ;;  %877 = vrot.lane.b32.xlu1 %v871_v46, %s4519_s19 }
 0xaad   :  { %952 = vrot.lane.b32.xlu0 %v4768_v47, %s4519_s19 }
 0xb1d   :  { %v878_v48 = vpop.permute.xlu1 %877 }
 0xb1e   :  { %3867 = vmatmul.mubr.msk.f32.vlgmr.msra.gmra.mrb[8].mxu1 %vm51_vm1, %v878_v48 }
 0xb1f   :  { %v953_v49 = vpop.permute.xlu0 %952  ;;  %4214 = vmatpush3.bf16.msra.mxu1 %v4605_v18  ;;  %3888 = vmatprep.mubr.msk.f32.mxu1 %vm4517_vm0, %v4515_v3 }
 0xb20   :  { %3878 = vmatmul.mubr.msk.f32.vlgmr.msra.gmra.mrb[12].mxu0 %vm51_vm1, %v953_v49  ;;  %4215 = vmatprep.subr.bf16.mxu1 %v4516_v4 }
 0xb21   :  { %4220 = vmatpush3.bf16.msra.mxu0 %v4619_v23  ;;  %3899 = vmatprep.mubr.msk.f32.mxu0 %vm4517_vm0, %v4515_v3 }
 0xb22   :  { %4221 = vmatprep.subr.bf16.mxu0 %v4516_v4 }
 0xb23   :  { %4217 = vmatpush3.bf16.msra.mxu1 %v4614_v21 }
 0xb24   :  { %4224 = vmatprep.subr.bf16.mxu1 %v4516_v4 }
 0xb25   :  { %4223 = vmatpush3.bf16.msra.mxu0 %v4636_v27 }
 0xb26   :  { %4230 = vmatprep.subr.bf16.mxu0 %v4516_v4 }
 0xbf1   :  { %v947_v51 = vpop.f32.mrb[8].mxu1 }
 0xbf2   :  { %v3868_v52 = vpop.f32.mrb[9].mxu1 }
 0xbf3   :  { %v1022_v53 = vpop.f32.mrb[12].mxu0 }
 0xbf4   :  { %v1027_v55 = vrot.slane %v1022_v53, 6  ;;  %v3879_v56 = vpop.f32.mrb[13].mxu0 }
 0xbf6   :  { %v1029_v57 = vsel %vm147_vm2, %v947_v51, %v1027_v55 }
 0xbf7   :  { %v1030_v58 = vadd.f32 %v1029_v57, %v4671_v54 }
 0xbf9   :  { %4419 = vtanh.f32 %v1030_v58  ;;  %v3549_v61 = vmul.f32 -1.442695, %v1030_v58 }
 0xbfb   :  { %4421 = vpow2.f32 %v3549_v61 }
 0xc03   :  { %v4420_v60 = vpop.eup %4419 }
 0xc04   :  { %1040 = vrot.lane.b32.xlu0 %v4420_v60, %s4518_s4 }
 0xc05   :  { %v4422_v1 = vpop.eup %4421 }
 0xc06   :  { %v1034_v2 = vadd.f32 1.0, %v4422_v1 }
 0xc08   :  { %4423 = vrcp.f32 %v1034_v2 }
 0xc12   :  { %v4424_v6 = vpop.eup %4423 }
 0xc13   :  { %v1038_v9 = vmul.f32 %v4424_v6, %v865_v44 }
 0xc76   :  { %v1041_v7 = vpop.permute.xlu0 %1040 }
 0xc77   :  { %v1043_v8 = vmul.f32 %v4424_v6, %v1041_v7 }
 0xc79   :  { %1045 = vrot.lane.b32.xlu1 %v1043_v8, %s4519_s19 }
 0xceb   :  { %v1046_v10 = vpop.permute.xlu1 %1045 }
 0xcec   :  { %v1048_v11 = vadd.f32 %v1046_v10, %v1038_v9 }
 0xcee   :  { %4425 = vtanh.f32 %v1048_v11 }
 0xcf8   :  { %v4426_v12 = vpop.eup %4425 }
 0xcf9   :  { %1051 = vrot.lane.b32.xlu0 %v4426_v12, %s4518_s4 }
 0xd6b   :  { %v1052_v54 = vpop.permute.xlu0 %1051 }
 0xd6c   :  { %v4792_v13 = vmul.f32 %v4424_v6, %v1052_v54 }
 0xd6e   :  { %1062 = vrot.lane.b32.xlu0 %v4792_v13, %s4519_s19  ;;  %v1136_v14 = vrot.slane %v4792_v13, 2 }
 0xd70   :  { %1137 = vrot.lane.b32.xlu1 %v1136_v14, %s4519_s19 }
 0xde0   :  { %v1063_v15 = vpop.permute.xlu0 %1062 }
 0xde1   :  { %3889 = vmatmul.mubr.msk.f32.vlgmr.msra.gmra.mrb[10].mxu1 %vm51_vm1, %v1063_v15 }
 0xde2   :  { %v1138_v59 = vpop.permute.xlu1 %1137  ;;  %4226 = vmatpush3.bf16.msra.mxu1 %v4605_v18  ;;  %3910 = vmatprep.mubr.msk.f32.mxu1 %vm4517_vm0, %v4515_v3 }
 0xde3   :  { %3900 = vmatmul.mubr.msk.f32.vlgmr.msra.gmra.mrb[14].mxu0 %vm51_vm1, %v1138_v59  ;;  %4227 = vmatprep.subr.bf16.mxu1 %v4516_v4 }
 0xde4   :  { %4232 = vmatpush3.bf16.msra.mxu0 %v4619_v23  ;;  %3921 = vmatprep.mubr.msk.f32.mxu0 %vm4517_vm0, %v4515_v3 }
 0xde5   :  { %4233 = vmatprep.subr.bf16.mxu0 %v4516_v4 }
 0xde6   :  { %4229 = vmatpush3.bf16.msra.mxu1 %v4614_v21 }
 0xde7   :  { %4236 = vmatprep.subr.bf16.mxu1 %v4516_v4 }
 0xde8   :  { %4235 = vmatpush3.bf16.msra.mxu0 %v4636_v27 }
 0xde9   :  { %4242 = vmatprep.subr.bf16.mxu0 %v4516_v4 }
 0xeb4   :  { %v1132_v17 = vpop.f32.mrb[10].mxu1 }
 0xeb5   :  { %v3890_v19 = vpop.f32.mrb[11].mxu1 }
 0xeb6   :  { %v1207_v20 = vpop.f32.mrb[14].mxu0 }
 0xeb7   :  { %v1212_v24 = vrot.slane %v1207_v20, 6  ;;  %v3901_v25 = vpop.f32.mrb[15].mxu0 }
 0xeb9   :  { %v1214_v26 = vsel %vm147_vm2, %v1132_v17, %v1212_v24 }
 0xeba   :  { %v1215_v28 = vadd.f32 %v1214_v26, %v4677_v62 }
 0xebc   :  { %4427 = vtanh.f32 %v1215_v28  ;;  %v3552_v33 = vmul.f32 -1.442695, %v1215_v28 }
 0xebe   :  { %4429 = vpow2.f32 %v3552_v33 }
 0xec6   :  { %v4428_v31 = vpop.eup %4427 }
 0xec7   :  { %1225 = vrot.lane.b32.xlu1 %v4428_v31, %s4518_s4 }
 0xec8   :  { %v4430_v34 = vpop.eup %4429 }
 0xec9   :  { %v1219_v35 = vadd.f32 1.0, %v4430_v34  ;;  %v1633_v34 = vsel %vm147_vm2, %v4768_v47, %v4743_v16 }
 0xecb   :  { %4431 = vrcp.f32 %v1219_v35  ;;  %v1606_v35 = vrot.slane %v4718_v50, 6  ;;  %v1638_v50 = vld [vmem:[%s5259_s2 + $0x10] sm:$0xff] }
 0xed5   :  { %v4432_v36 = vpop.eup %4431 }
 0xed6   :  { %v1223_v39 = vmul.f32 %v4432_v36, %v1048_v11 }
 0xf39   :  { %v1226_v37 = vpop.permute.xlu1 %1225 }
 0xf3a   :  { %v1228_v38 = vmul.f32 %v4432_v36, %v1226_v37  ;;  %v3564_v37 = vld [vmem:[%s5256_s3 + $0x48] sm:$0xff] }
 0xf3c   :  { %1230 = vrot.lane.b32.xlu0 %v1228_v38, %s4519_s19  ;;  %v3565_v38 = vld [vmem:[%s5256_s3 + $0x50] sm:$0xff] }
 0xfae   :  { %v1231_v40 = vpop.permute.xlu0 %1230 }
 0xfaf   :  { %v1233_v41 = vadd.f32 %v1231_v40, %v1223_v39  ;;  %v1645_v40 = vld [vmem:[%s5259_s2 + $0x48] sm:$0xff] }
 0xfb1   :  { %4433 = vtanh.f32 %v1233_v41 }
 0xfbb   :  { %v4434_v42 = vpop.eup %4433 }
 0xfbc   :  { %1236 = vrot.lane.b32.xlu1 %v4434_v42, %s4518_s4 }
0x102e   :  { %v1237_v62 = vpop.permute.xlu1 %1236 }
0x102f   :  { %v4817_v43 = vmul.f32 %v4432_v36, %v1237_v62  ;;  %v3563_v36 = vld [vmem:[%s5256_s3 + $0x40] sm:$0xff] }
0x1030   :  { %v4879_v42 = vpack.c.bf16 %v3564_v37, %v3563_v36  ;;  %v1644_v62 = vld [vmem:[%s5259_s2 + $0x40] sm:$0xff] }
0x1031   :  { %1244 = vrot.lane.b32.xlu1 %v4817_v43, %s4519_s19  ;;  %v1318_v44 = vrot.slane %v4817_v43, 2 }
0x1033   :  { %1319 = vrot.lane.b32.xlu0 %v1318_v44, %s4519_s19  ;;  %v1634_v44 = vsel %vm1619_vm3, %v1633_v34, %v1606_v35 }
0x10a3   :  { %v1245_v45 = vpop.permute.xlu1 %1244 }
0x10a4   :  { %3911 = vmatmul.mubr.msk.f32.vlgmr.msra.gmra.mrb[12].mxu1 %vm51_vm1, %v1245_v45 }
0x10a5   :  { %v1320_v5 = vpop.permute.xlu0 %1319  ;;  %4238 = vmatpush3.bf16.msra.mxu1 %v4605_v18  ;;  %3932 = vmatprep.mubr.msk.f32.mxu1 %vm4517_vm0, %v4515_v3 }
0x10a6   :  { %3922 = vmatmul.mubr.msk.f32.vlgmr.msra.gmra.mrb[16].mxu0 %vm51_vm1, %v1320_v5  ;;  %4239 = vmatprep.subr.bf16.mxu1 %v4516_v4  ;;  %v1646_v5 = vld [vmem:[%s5259_s2 + $0x50] sm:$0xff] }
0x10a7   :  { %4244 = vmatpush3.bf16.msra.mxu0 %v4619_v23  ;;  %3943 = vmatprep.mubr.msk.f32.mxu0 %vm4517_vm0, %v4515_v3 }
0x10a8   :  { %4245 = vmatprep.subr.bf16.mxu0 %v4516_v4 }
0x10a9   :  { %4241 = vmatpush3.bf16.msra.mxu1 %v4614_v21 }
0x10ab   :  { %4247 = vmatpush3.bf16.msra.mxu0 %v4636_v27 }
0x10ac   :  { %4264 = vmatprep.subr.bf16.mxu0 %v4516_v4 }
0x1177   :  { %v1314_v18 = vpop.f32.mrb[12].mxu1 }
0x1178   :  { %v3912_v46 = vpop.f32.mrb[13].mxu1 }
0x1179   :  { %v1389_v48 = vpop.f32.mrb[16].mxu0  ;;  %v1651_v46 = vld [vmem:[%s5259_s2 + $0x78] sm:$0xff] }
0x117a   :  { %v1394_v49 = vrot.slane %v1389_v48, 6  ;;  %v3923_v51 = vpop.f32.mrb[17].mxu0  ;;  %v1628_v48 = vrot.slane %v4694_v22, 4 }
0x117c   :  { %v1396_v52 = vsel %vm147_vm2, %v1314_v18, %v1394_v49  ;;  %v1649_v18 = vld [vmem:[%s5259_s2 + $0x68] sm:$0xff]  ;;  %v4250_v49 = vpack.c.bf16 %v1646_v5, %v1644_v62 }
0x117d   :  { %v1397_v23 = vadd.f32 %v1396_v52, %v4680_v63  ;;  %v4252_v51 = vpack.c.bf16 %v1651_v46, %v1649_v18  ;;  %v3566_v52 = vld [vmem:[%s5256_s3 + $0x58] sm:$0xff] }
0x117f   :  { %4435 = vtanh.f32 %v1397_v23  ;;  %v3555_v55 = vmul.f32 -1.442695, %v1397_v23  ;;  %v1648_v23 = vld [vmem:[%s5259_s2 + $0x60] sm:$0xff] }
0x1181   :  { %4437 = vpow2.f32 %v3555_v55  ;;  %v4909_v55 = vpack.c.bf16 %v3566_v52, %v3565_v38 }
0x1189   :  { %v4436_v53 = vpop.eup %4435 }
0x118a   :  { %1407 = vrot.lane.b32.xlu0 %v4436_v53, %s4518_s4  ;;  %v1650_v53 = vld [vmem:[%s5259_s2 + $0x70] sm:$0xff] }
0x118b   :  { %v4438_v21 = vpop.eup %4437 }
0x118c   :  { %v1401_v56 = vadd.f32 1.0, %v4438_v21  ;;  %v1635_v21 = vsel %vm1621_vm4, %v1634_v44, %v1628_v48  ;;  %v1826_v44 = vld [vmem:[%s5260_s5] sm:$0x3] }
0x118d   :  { %v1835_v5 = vrot.slane %v1826_v44, %v47_v32 }
0x118e   :  { %4439 = vrcp.f32 %v1401_v56  ;;  %v4254_v56 = vpack.c.bf16 %v1650_v53, %v1648_v23 }
0x1198   :  { %v4440_v27 = vpop.eup %4439 }
0x1199   :  { %v1405_v60 = vmul.f32 %v4440_v27, %v1233_v41  ;;  %v1647_v41 = vld [vmem:[%s5259_s2 + $0x58] sm:$0xff] }
0x119a   :  { %v4248_v45 = vpack.c.bf16 %v1647_v41, %v1645_v40 }
0x119c   :  { %4249 = vmatprep.subr.bf16.mxu1 %v4248_v45  ;;  %v1831_v45 = vrot.slane %v1826_v44, %v43_v30 }
0x11fc   :  { %v1408_v57 = vpop.permute.xlu0 %1407 }
0x11fd   :  { %v1410_v58 = vmul.f32 %v4440_v27, %v1408_v57  ;;  %v3568_v57 = vld [vmem:[%s5256_s3 + $0x68] sm:$0xff] }
0x11ff   :  { %1412 = vrot.lane.b32.xlu1 %v1410_v58, %s4519_s19  ;;  %v1637_v58 = vld [vmem:[%s5259_s2 + $0x8] sm:$0xff] }
0x1271   :  { %v1413_v61 = vpop.permute.xlu1 %1412 }
0x1272   :  { %v1415_v1 = vadd.f32 %v1413_v61, %v1405_v60  ;;  %v1639_v60 = vld [vmem:[%s5259_s2 + $0x18] sm:$0xff] }
0x1274   :  { %4441 = vtanh.f32 %v1415_v1 }
0x127e   :  { %v4442_v2 = vpop.eup %4441 }
0x127f   :  { %1418 = vrot.lane.b32.xlu0 %v4442_v2, %s4518_s4  ;;  %v3569_v2 = vld [vmem:[%s5256_s3 + $0x70] sm:$0xff] }
0x12f1   :  { %v1419_v63 = vpop.permute.xlu0 %1418 }
0x12f2   :  { %v4841_v6 = vmul.f32 %v4440_v27, %v1419_v63  ;;  %v3567_v27 = vld [vmem:[%s5256_s3 + $0x60] sm:$0xff]  ;;  %v3570_v63 = vld [vmem:[%s5256_s3 + $0x78] sm:$0xff] }
0x12f3   :  { %v4930_v61 = vpack.c.bf16 %v3568_v57, %v3567_v27 }
0x12f4   :  { %1428 = vrot.lane.b32.xlu0 %v4841_v6, %s4519_s19  ;;  %v1502_v7 = vrot.slane %v4841_v6, 2 }
0x12f6   :  { %1503 = vrot.lane.b32.xlu1 %v1502_v7, %s4519_s19  ;;  %v4940_v7 = vpack.c.bf16 %v3570_v63, %v3569_v2 }
0x1366   :  { %v1429_v8 = vpop.permute.xlu0 %1428 }
0x1367   :  { %3933 = vmatmul.mubr.msk.f32.vlgmr.msra.gmra.mrb[14].mxu1 %vm51_vm1, %v1429_v8  ;;  %v1611_v8 = vrot.slane %v4817_v43, 6 }
0x1368   :  { %v1504_v9 = vpop.permute.xlu1 %1503  ;;  %1726 = vmatprep.mubr.f32.mxu1 %v4515_v3  ;;  %4251 = vmatpush1.bf16.msra.mxu1 %v4250_v49 }
0x1369   :  { %3944 = vmatmul.mubr.msk.f32.vlgmr.msra.gmra.mrb[18].mxu0 %vm51_vm1, %v1504_v9  ;;  %4253 = vmatprep.subr.bf16.mxu1 %v4252_v51 }
0x136a   :  { %3954 = vmatprep.mubr.msk.f32.mxu0 %vm4517_vm0, %v4515_v3  ;;  %4266 = vmatpush3.bf16.msra.mxu0 %v4879_v42 }
0x136b   :  { %4267 = vmatprep.subr.bf16.mxu0 %v4516_v4 }
0x136c   :  { %4255 = vmatpush1.bf16.msra.mxu1 %v4254_v56 }
0x136e   :  { %4269 = vmatpush3.bf16.msra.mxu0 %v4909_v55 }
0x136f   :  { %4270 = vmatprep.subr.bf16.mxu0 %v4516_v4 }
0x1371   :  { %3955 = vmatmul.mubr.f32.vlgmr.msra.gmra.mrb[20].mxu0 %v4515_v3 }
0x1372   :  { %3965 = vmatprep.mubr.msk.f32.mxu0 %vm4517_vm0, %v4515_v3  ;;  %4272 = vmatpush3.bf16.msra.mxu0 %v4930_v61 }
0x1373   :  { %4273 = vmatprep.subr.bf16.mxu0 %v4516_v4 }
0x1376   :  { %4275 = vmatpush3.bf16.msra.mxu0 %v4940_v7 }
0x1377   :  { %4282 = vmatprep.subr.bf16.mxu0 %v4516_v4 }
0x1379   :  { %3966 = vmatmul.mubr.f32.vlgmr.msra.gmra.mrb[22].mxu0 %v4515_v3 }
0x137a   :  { %4284 = vmatpush3.bf16.msra.mxu0 %v4930_v61  ;;  %3987 = vmatprep.mubr.msk.f32.mxu0 %vm4517_vm0, %v4515_v3 }
0x137b   :  { %4285 = vmatprep.subr.bf16.mxu0 %v4516_v4 }
0x137e   :  { %4287 = vmatpush3.bf16.msra.mxu0 %v4940_v7 }
0x137f   :  { %4294 = vmatprep.subr.bf16.mxu0 %v4516_v4 }
0x143a   :  { %v1498_v10 = vpop.f32.mrb[14].mxu1 }
0x143b   :  { %v3934_v11 = vpop.f32.mrb[15].mxu1 }
0x143c   :  { %v1573_v12 = vpop.f32.mrb[18].mxu0 }
0x143d   :  { %v1578_v54 = vrot.slane %v1573_v12, 6  ;;  %v3945_v14 = vpop.f32.mrb[19].mxu0 }
0x143f   :  { %v1580_v15 = vsel %vm147_vm2, %v1498_v10, %v1578_v54  ;;  %v1613_v10 = vrot.slane %v4841_v6, 4  ;;  %v1623_v54 = vsel %vm147_vm2, %v4792_v13, %v1611_v8 }
0x1440   :  { %v1581_v59 = vadd.f32 %v1580_v15, %v4683_v0 }
0x1441   :  { %v1624_v43 = vsel %vm1619_vm3, %v1623_v54, %v1613_v10 }
0x1442   :  { %4443 = vtanh.f32 %v1581_v59  ;;  %v3558_v19 = vmul.f32 -1.442695, %v1581_v59  ;;  %v1626_v59 = vrot.slane %v4792_v13, 4 }
0x1444   :  { %4445 = vpow2.f32 %v3558_v19  ;;  %v1608_v19 = vrot.slane %v4743_v16, 4  ;;  %v1922_v16 = vpop.f32.mrb[20].mxu0 }
0x144c   :  { %v4444_v17 = vpop.eup %4443 }
0x144d   :  { %1591 = vrot.lane.b32.xlu1 %v4444_v17, %s4518_s4 }
0x144e   :  { %v4446_v20 = vpop.eup %4445 }
0x144f   :  { %v1585_v24 = vadd.f32 1.0, %v4446_v20 }
0x1451   :  { %4447 = vrcp.f32 %v1585_v24 }
0x145b   :  { %v4855_v25 = vpop.eup %4447 }
0x145c   :  { %v1589_v31 = vmul.f32 %v4855_v25, %v1415_v1  ;;  %v4256_v1 = vpack.c.bf16 %v1639_v60, %v1637_v58 }
0x145e   :  { %4257 = vmatprep.subr.bf16.mxu1 %v4256_v1 }
0x14bf   :  { %v1592_v26 = vpop.permute.xlu1 %1591 }
0x14c0   :  { %v1594_v28 = vmul.f32 %v4855_v25, %v1592_v26  ;;  %v1636_v26 = vld [vmem:[%s5259_s2] sm:$0xff] }
0x14c2   :  { %1596 = vrot.lane.b32.xlu0 %v1594_v28, %s4519_s19  ;;  %v4258_v28 = vpack.c.bf16 %v1638_v50, %v1636_v26 }
0x1534   :  { %v1597_v33 = vpop.permute.xlu0 %1596 }
0x1535   :  { %v1599_v0 = vadd.f32 %v1597_v33, %v1589_v31  ;;  %v1640_v33 = vld [vmem:[%s5259_s2 + $0x20] sm:$0xff] }
0x1537   :  { %4449 = vtanh.f32 %v1599_v0  ;;  %v1642_v0 = vld [vmem:[%s5259_s2 + $0x30] sm:$0xff] }
0x1541   :  { %v4450_v39 = vpop.eup %4449 }
0x1542   :  { %1602 = vrot.lane.b32.xlu1 %v4450_v39, %s4518_s4 }
0x1546   :  { %1656 = vrot.lane.b32.xlu1 %v1635_v21, %s4519_s19 }
0x15b4   :  { %v1603_v9 = vpop.permute.xlu1 %1602 }
0x15b5   :  { %v1605_v11 = vmul.f32 %v4855_v25, %v1603_v9  ;;  %v3956_v25 = vpop.f32.mrb[21].mxu0 }
0x15b6   :  { %v1992_v39 = vpop.f32.mrb[22].mxu0 }
0x15b7   :  { %v1616_v12 = vrot.slane %v1605_v11, 2  ;;  %v1997_v40 = vrot.slane %v1992_v39, 6  ;;  %v3967_v41 = vpop.f32.mrb[23].mxu0 }
0x15b8   :  { %v1657_v36 = vpop.permute.xlu1 %1656 }
0x15b9   :  { %v1630_v14 = vsel %vm147_vm2, %v1616_v12, %v4841_v6  ;;  %v1625_v15 = vsel %vm1621_vm4, %v1624_v43, %v1616_v12  ;;  %v1618_v6 = vsel %vm147_vm2, %v4694_v22, %v1606_v35  ;;  %v1641_v22 = vld [vmem:[%s5259_s2 + $0x28] sm:$0xff]  ;;  %v4262_v35 = vpack.c.bf16 %v1642_v0, %v1640_v33 }
0x15ba   :  { %1743 = vrot.lane.b32.xlu1 %v1625_v15, %s4519_s19  ;;  %v1631_v17 = vsel %vm1619_vm3, %v1630_v14, %v1611_v8  ;;  %v1620_v13 = vsel %vm1619_vm3, %v1618_v6, %v1608_v19  ;;  %v1999_v62 = vsel %vm147_vm2, %v1922_v16, %v1997_v40 }
0x15bb   :  { %v1632_v20 = vsel %vm1621_vm4, %v1631_v17, %v1626_v59  ;;  %v1622_v24 = vsel %vm1621_vm4, %v1620_v13, %v4768_v47  ;;  %v1643_v47 = vld [vmem:[%s5259_s2 + $0x38] sm:$0xff] }
0x15bc   :  { %1654 = vrot.lane.b32.xlu0 %v1632_v20, %s4519_s19  ;;  %v4260_v31 = vpack.c.bf16 %v1643_v47, %v1641_v22 }
0x15c0   :  { %1741 = vrot.lane.b32.xlu0 %v1622_v24, %s4519_s19 }
0x162c   :  { %v1744_v38 = vpop.permute.xlu1 %1743 }
0x162e   :  { %v1655_v34 = vpop.permute.xlu0 %1654 }
0x162f   :  { %3559 = vmatmul.mubr.msk.f32.vlgmr.msra.gmra.mrb[16].mxu1 %vm51_vm1, %v1655_v34 }
0x1630   :  { %4259 = vmatpush1.bf16.msra.mxu1 %v4258_v28  ;;  %1732 = vmatprep.mubr.f32.mxu1 %v4515_v3 }
0x1631   :  { %4261 = vmatprep.subr.bf16.mxu1 %v4260_v31 }
0x1632   :  { %v1742_v37 = vpop.permute.xlu0 %1741 }
0x1633   :  { %3560 = vmatmul.mubr.msk.f32.gmra.mrb[18].mxu1 %vm51_vm1, %v1657_v36 }
0x1634   :  { %4263 = vmatpush1.bf16.msra.mxu1 %v4262_v35  ;;  %1813 = vmatprep.mubr.f32.mxu1 %v4515_v3 }
0x1635   :  { %4276 = vmatprep.subr.bf16.mxu1 %v4516_v4 }
0x1637   :  { %3561 = vmatmul.mubr.msk.f32.vlgmr.msra.gmra.mrb[16].mxu1 %vm51_vm1, %v1742_v37 }
0x1638   :  { %1819 = vmatprep.mubr.f32.mxu1 %v4515_v3  ;;  %4278 = vmatpush3.bf16.msra.mxu1 %v4879_v42 }
0x1639   :  { %4279 = vmatprep.subr.bf16.mxu1 %v4516_v4 }
0x163b   :  { %3562 = vmatmul.mubr.msk.f32.gmra.mrb[18].mxu1 %vm51_vm1, %v1744_v38 }
0x163c   :  { %4281 = vmatpush3.bf16.msra.mxu1 %v4909_v55  ;;  %3976 = vmatprep.mubr.msk.f32.mxu1 %vm4517_vm0, %v4515_v3 }
0x163d   :  { %4288 = vmatprep.subr.bf16.mxu1 %v4516_v4 }
0x170a   :  { %v1815_v18 = vpop.f32.mrb[16].mxu1 }
0x170b   :  { %v1838_v46 = vadd.f32 %v1831_v45, %v1815_v18  ;;  %v1817_v48 = vpop.f32.mrb[17].mxu1 }
0x170c   :  { %v1839_v49 = vadd.f32 %v1835_v5, %v1817_v48 }
0x170d   :  { %v2026_v23 = vrot.slane %v1838_v46, 2  ;;  %v2210_v53 = vrot.slane %v1838_v46, 4  ;;  %v2392_v27 = vrot.slane %v1838_v46, 6 }
0x170e   :  { %v2577_v51 = vrot.slane %v1839_v49, 4  ;;  %v1821_v52 = vpop.f32.mrb[18].mxu1  ;;  %v2762_v57 = vrot.slane %v1839_v49, 2  ;;  %v3128_v58 = vrot.slane %v1839_v49, 6 }
0x170f   :  { %v1840_v21 = vadd.f32 %v1831_v45, %v1821_v52  ;;  %v1823_v56 = vpop.f32.mrb[19].mxu1 }
0x1710   :  { %v1841_v60 = vadd.f32 %v1835_v5, %v1823_v56 }
0x1711   :  { %v2760_v1 = vrot.slane %v1840_v21, 2  ;;  %v2944_v2 = vrot.slane %v1840_v21, 4  ;;  %v3126_v30 = vrot.slane %v1840_v21, 6  ;;  %v5015_v29 = vsel %vm147_vm2, %v1840_v21, %v2577_v51 }
0x1712   :  { %v1853_v32 = vrot.slane %v1841_v60, 4  ;;  %v2028_v63 = vrot.slane %v1841_v60, 2  ;;  %v2394_v8 = vrot.slane %v1841_v60, 6  ;;  %v5018_v9 = vsel %vm147_vm2, %v2210_v53, %v1841_v60 }
0x1713   :  { %v5021_v10 = vsel %vm147_vm2, %v2760_v1, %v2762_v57  ;;  %v5024_v11 = vsel %vm147_vm2, %v2944_v2, %v1839_v49  ;;  %v5027_v12 = vsel %vm147_vm2, %v3126_v30, %v3128_v58 }
0x1714   :  { %v1855_v54 = vsel %vm147_vm2, %v1838_v46, %v1853_v32  ;;  %v2030_v43 = vsel %vm147_vm2, %v2026_v23, %v2028_v63  ;;  %v5032_v14 = vsel %vm147_vm2, %v2392_v27, %v2394_v8 }
0x1715   :  { %v2000_v15 = vadd.f32 %v1999_v62, %v1855_v54 }
0x1717   :  { %4451 = vtanh.f32 %v2000_v15  ;;  %v3571_v17 = vmul.f32 -1.442695, %v2000_v15 }
0x1719   :  { %4453 = vpow2.f32 %v3571_v17 }
0x1721   :  { %v4452_v59 = vpop.eup %4451 }
0x1722   :  { %2010 = vrot.lane.b32.xlu0 %v4452_v59, %s4518_s4 }
0x1723   :  { %v4454_v19 = vpop.eup %4453 }
0x1724   :  { %v2004_v20 = vadd.f32 1.0, %v4454_v19 }
0x1726   :  { %4455 = vrcp.f32 %v2004_v20 }
0x1730   :  { %v4456_v6 = vpop.eup %4455 }
0x1731   :  { %v2008_v16 = vmul.f32 0.0, %v4456_v6 }
0x1794   :  { %v2011_v13 = vpop.permute.xlu0 %2010 }
0x1795   :  { %v2013_v24 = vmul.f32 %v4456_v6, %v2011_v13 }
0x1797   :  { %2015 = vrot.lane.b32.xlu1 %v2013_v24, %s4519_s19 }
0x1809   :  { %v2016_v25 = vpop.permute.xlu1 %2015 }
0x180a   :  { %v2018_v26 = vadd.f32 %v2016_v25, %v2008_v16 }
0x180c   :  { %4457 = vtanh.f32 %v2018_v26 }
0x1816   :  { %v4458_v50 = vpop.eup %4457 }
0x1817   :  { %2021 = vrot.lane.b32.xlu0 %v4458_v50, %s4518_s4 }
0x1889   :  { %v2022_v22 = vpop.permute.xlu0 %2021 }
0x188a   :  { %v5037_v47 = vmul.f32 %v4456_v6, %v2022_v22 }
0x188c   :  { %2032 = vrot.lane.b32.xlu0 %v5037_v47, %s4519_s19  ;;  %v2106_v28 = vrot.slane %v5037_v47, 2 }
0x188e   :  { %2107 = vrot.lane.b32.xlu1 %v2106_v28, %s4519_s19 }
0x18fe   :  { %v2033_v31 = vpop.permute.xlu0 %2032 }
0x18ff   :  { %3977 = vmatmul.mubr.msk.f32.vlgmr.msra.gmra.mrb[20].mxu1 %vm51_vm1, %v2033_v31 }
0x1900   :  { %v2108_v33 = vpop.permute.xlu1 %2107  ;;  %4290 = vmatpush3.bf16.msra.mxu1 %v4879_v42  ;;  %3998 = vmatprep.mubr.msk.f32.mxu1 %vm4517_vm0, %v4515_v3 }
0x1901   :  { %3988 = vmatmul.mubr.msk.f32.vlgmr.msra.gmra.mrb[24].mxu0 %vm51_vm1, %v2108_v33  ;;  %4291 = vmatprep.subr.bf16.mxu1 %v4516_v4 }
0x1902   :  { %4296 = vmatpush3.bf16.msra.mxu0 %v4930_v61  ;;  %4009 = vmatprep.mubr.msk.f32.mxu0 %vm4517_vm0, %v4515_v3 }
0x1903   :  { %4297 = vmatprep.subr.bf16.mxu0 %v4516_v4 }
0x1904   :  { %4293 = vmatpush3.bf16.msra.mxu1 %v4909_v55 }
0x1905   :  { %4300 = vmatprep.subr.bf16.mxu1 %v4516_v4 }
0x1906   :  { %4299 = vmatpush3.bf16.msra.mxu0 %v4940_v7 }
0x1907   :  { %4306 = vmatprep.subr.bf16.mxu0 %v4516_v4 }
0x19d2   :  { %v2102_v0 = vpop.f32.mrb[20].mxu1 }
0x19d3   :  { %v3978_v34 = vpop.f32.mrb[21].mxu1 }
0x19d4   :  { %v2177_v35 = vpop.f32.mrb[24].mxu0 }
0x19d5   :  { %v2182_v36 = vrot.slane %v2177_v35, 6  ;;  %v3989_v37 = vpop.f32.mrb[25].mxu0 }
0x19d7   :  { %v2184_v38 = vsel %vm147_vm2, %v2102_v0, %v2182_v36 }
0x19d8   :  { %v2185_v39 = vadd.f32 %v2184_v38, %v2030_v43 }
0x19da   :  { %4459 = vtanh.f32 %v2185_v39  ;;  %v3574_v41 = vmul.f32 -1.442695, %v2185_v39 }
0x19dc   :  { %4461 = vpow2.f32 %v3574_v41 }
0x19e4   :  { %v4460_v40 = vpop.eup %4459 }
0x19e5   :  { %2195 = vrot.lane.b32.xlu1 %v4460_v40, %s4518_s4 }
0x19e6   :  { %v4462_v62 = vpop.eup %4461 }
0x19e7   :  { %v2189_v44 = vadd.f32 1.0, %v4462_v62 }
0x19e9   :  { %4463 = vrcp.f32 %v2189_v44 }
0x19f3   :  { %v4464_v45 = vpop.eup %4463 }
0x19f4   :  { %v2193_v46 = vmul.f32 %v4464_v45, %v2018_v26 }
0x1a57   :  { %v2196_v5 = vpop.permute.xlu1 %2195 }
0x1a58   :  { %v2198_v18 = vmul.f32 %v4464_v45, %v2196_v5 }
0x1a5a   :  { %2200 = vrot.lane.b32.xlu0 %v2198_v18, %s4519_s19 }
0x1acc   :  { %v2201_v48 = vpop.permute.xlu0 %2200 }
0x1acd   :  { %v2203_v49 = vadd.f32 %v2201_v48, %v2193_v46 }
0x1acf   :  { %4465 = vtanh.f32 %v2203_v49 }
0x1ad9   :  { %v4466_v51 = vpop.eup %4465 }
0x1ada   :  { %2206 = vrot.lane.b32.xlu1 %v4466_v51, %s4518_s4 }
0x1b4c   :  { %v2207_v52 = vpop.permute.xlu1 %2206 }
0x1b4d   :  { %v5061_v23 = vmul.f32 %v4464_v45, %v2207_v52 }
0x1b4f   :  { %2214 = vrot.lane.b32.xlu1 %v5061_v23, %s4519_s19  ;;  %v2288_v53 = vrot.slane %v5061_v23, 2 }
0x1b51   :  { %2289 = vrot.lane.b32.xlu0 %v2288_v53, %s4519_s19 }
0x1bc1   :  { %v2215_v21 = vpop.permute.xlu1 %2214 }
0x1bc2   :  { %3999 = vmatmul.mubr.msk.f32.vlgmr.msra.gmra.mrb[22].mxu1 %vm51_vm1, %v2215_v21 }
0x1bc3   :  { %v2290_v56 = vpop.permute.xlu0 %2289  ;;  %4302 = vmatpush3.bf16.msra.mxu1 %v4879_v42  ;;  %4020 = vmatprep.mubr.msk.f32.mxu1 %vm4517_vm0, %v4515_v3 }
0x1bc4   :  { %4010 = vmatmul.mubr.msk.f32.vlgmr.msra.gmra.mrb[26].mxu0 %vm51_vm1, %v2290_v56  ;;  %4303 = vmatprep.subr.bf16.mxu1 %v4516_v4 }
0x1bc5   :  { %4308 = vmatpush3.bf16.msra.mxu0 %v4930_v61  ;;  %4031 = vmatprep.mubr.msk.f32.mxu0 %vm4517_vm0, %v4515_v3 }
0x1bc6   :  { %4309 = vmatprep.subr.bf16.mxu0 %v4516_v4 }
0x1bc7   :  { %4305 = vmatpush3.bf16.msra.mxu1 %v4909_v55 }
0x1bc8   :  { %4312 = vmatprep.subr.bf16.mxu1 %v4516_v4 }
0x1bc9   :  { %4311 = vmatpush3.bf16.msra.mxu0 %v4940_v7 }
0x1bca   :  { %4318 = vmatprep.subr.bf16.mxu0 %v4516_v4 }
0x1c95   :  { %v2284_v27 = vpop.f32.mrb[22].mxu1 }
0x1c96   :  { %v4000_v57 = vpop.f32.mrb[23].mxu1 }
0x1c97   :  { %v2359_v58 = vpop.f32.mrb[26].mxu0 }
0x1c98   :  { %v2364_v60 = vrot.slane %v2359_v58, 6  ;;  %v4011_v1 = vpop.f32.mrb[27].mxu0 }
0x1c9a   :  { %v2366_v2 = vsel %vm147_vm2, %v2284_v27, %v2364_v60 }
0x1c9b   :  { %v2367_v30 = vadd.f32 %v2366_v2, %v5018_v9 }
0x1c9d   :  { %4467 = vtanh.f32 %v2367_v30  ;;  %v3577_v63 = vmul.f32 -1.442695, %v2367_v30 }
0x1c9f   :  { %4469 = vpow2.f32 %v3577_v63 }
0x1ca7   :  { %v4468_v32 = vpop.eup %4467 }
0x1ca8   :  { %2377 = vrot.lane.b32.xlu0 %v4468_v32, %s4518_s4 }
0x1ca9   :  { %v4470_v8 = vpop.eup %4469 }
0x1caa   :  { %v2371_v54 = vadd.f32 1.0, %v4470_v8 }
0x1cac   :  { %4471 = vrcp.f32 %v2371_v54 }
0x1cb6   :  { %v4472_v43 = vpop.eup %4471 }
0x1cb7   :  { %v2375_v17 = vmul.f32 %v4472_v43, %v2203_v49 }
0x1d1a   :  { %v2378_v15 = vpop.permute.xlu0 %2377 }
0x1d1b   :  { %v2380_v59 = vmul.f32 %v4472_v43, %v2378_v15 }
0x1d1d   :  { %2382 = vrot.lane.b32.xlu1 %v2380_v59, %s4519_s19 }
0x1d8f   :  { %v2383_v19 = vpop.permute.xlu1 %2382 }
0x1d90   :  { %v2385_v20 = vadd.f32 %v2383_v19, %v2375_v17 }
0x1d92   :  { %4473 = vtanh.f32 %v2385_v20 }
0x1d9c   :  { %v4474_v6 = vpop.eup %4473 }
0x1d9d   :  { %2388 = vrot.lane.b32.xlu0 %v4474_v6, %s4518_s4 }
0x1e0f   :  { %v2389_v9 = vpop.permute.xlu0 %2388 }
0x1e10   :  { %v5086_v13 = vmul.f32 %v4472_v43, %v2389_v9 }
0x1e12   :  { %2398 = vrot.lane.b32.xlu0 %v5086_v13, %s4519_s19  ;;  %v2472_v24 = vrot.slane %v5086_v13, 2 }
0x1e14   :  { %2473 = vrot.lane.b32.xlu1 %v2472_v24, %s4519_s19 }
0x1e84   :  { %v2399_v16 = vpop.permute.xlu0 %2398 }
0x1e85   :  { %4021 = vmatmul.mubr.msk.f32.vlgmr.msra.gmra.mrb[24].mxu1 %vm51_vm1, %v2399_v16 }
0x1e86   :  { %v2474_v25 = vpop.permute.xlu1 %2473  ;;  %4314 = vmatpush3.bf16.msra.mxu1 %v4879_v42  ;;  %4042 = vmatprep.mubr.msk.f32.mxu1 %vm4517_vm0, %v4515_v3 }
0x1e87   :  { %4032 = vmatmul.mubr.msk.f32.vlgmr.msra.gmra.mrb[28].mxu0 %vm51_vm1, %v2474_v25  ;;  %4315 = vmatprep.subr.bf16.mxu1 %v4516_v4 }
0x1e88   :  { %4320 = vmatpush3.bf16.msra.mxu0 %v4930_v61  ;;  %4053 = vmatprep.mubr.msk.f32.mxu0 %vm4517_vm0, %v4515_v3 }
0x1e89   :  { %4321 = vmatprep.subr.bf16.mxu0 %v4516_v4 }
0x1e8a   :  { %4317 = vmatpush3.bf16.msra.mxu1 %v4909_v55 }
0x1e8b   :  { %4324 = vmatprep.subr.bf16.mxu1 %v4516_v4 }
0x1e8c   :  { %4323 = vmatpush3.bf16.msra.mxu0 %v4940_v7 }
0x1e8d   :  { %4330 = vmatprep.subr.bf16.mxu0 %v4516_v4 }
0x1f58   :  { %v2468_v26 = vpop.f32.mrb[24].mxu1 }
0x1f59   :  { %v4022_v50 = vpop.f32.mrb[25].mxu1 }
0x1f5a   :  { %v2543_v22 = vpop.f32.mrb[28].mxu0 }
0x1f5b   :  { %v2548_v28 = vrot.slane %v2543_v22, 6  ;;  %v4033_v31 = vpop.f32.mrb[29].mxu0 }
0x1f5d   :  { %v2550_v33 = vsel %vm147_vm2, %v2468_v26, %v2548_v28 }
0x1f5e   :  { %v2551_v0 = vadd.f32 %v2550_v33, %v5032_v14 }
0x1f60   :  { %4475 = vtanh.f32 %v2551_v0  ;;  %v3580_v35 = vmul.f32 -1.442695, %v2551_v0 }
0x1f62   :  { %4477 = vpow2.f32 %v3580_v35 }
0x1f6a   :  { %v4476_v34 = vpop.eup %4475 }
0x1f6b   :  { %2561 = vrot.lane.b32.xlu1 %v4476_v34, %s4518_s4 }
0x1f6c   :  { %v4478_v36 = vpop.eup %4477 }
0x1f6d   :  { %v2555_v37 = vadd.f32 1.0, %v4478_v36 }
0x1f6f   :  { %4479 = vrcp.f32 %v2555_v37 }
0x1f79   :  { %v4480_v38 = vpop.eup %4479 }
0x1f7a   :  { %v2559_v41 = vmul.f32 %v4480_v38, %v2385_v20 }
0x1fdd   :  { %v2562_v39 = vpop.permute.xlu1 %2561 }
0x1fde   :  { %v2564_v40 = vmul.f32 %v4480_v38, %v2562_v39 }
0x1fe0   :  { %2566 = vrot.lane.b32.xlu0 %v2564_v40, %s4519_s19 }
0x2052   :  { %v2567_v62 = vpop.permute.xlu0 %2566 }
0x2053   :  { %v2569_v44 = vadd.f32 %v2567_v62, %v2559_v41 }
0x2055   :  { %4481 = vtanh.f32 %v2569_v44 }
0x205f   :  { %v4482_v45 = vpop.eup %4481 }
0x2060   :  { %2572 = vrot.lane.b32.xlu1 %v4482_v45, %s4518_s4 }
0x20d2   :  { %v2573_v14 = vpop.permute.xlu1 %2572 }
0x20d3   :  { %v2575_v5 = vmul.f32 %v4480_v38, %v2573_v14 }
0x20d5   :  { %v5111_v18 = vrot.slane %v2575_v5, 2  ;;  %2581 = vrot.lane.b32.xlu1 %v2575_v5, %s4519_s19 }
0x20d7   :  { %2656 = vrot.lane.b32.xlu0 %v5111_v18, %s4519_s19 }
0x2147   :  { %v2582_v46 = vpop.permute.xlu1 %2581 }
0x2148   :  { %4043 = vmatmul.mubr.msk.f32.vlgmr.msra.gmra.mrb[26].mxu1 %vm51_vm1, %v2582_v46 }
0x2149   :  { %v2657_v48 = vpop.permute.xlu0 %2656  ;;  %4326 = vmatpush3.bf16.msra.mxu1 %v4879_v42  ;;  %4064 = vmatprep.mubr.msk.f32.mxu1 %vm4517_vm0, %v4515_v3 }
0x214a   :  { %4054 = vmatmul.mubr.msk.f32.vlgmr.msra.gmra.mrb[30].mxu0 %vm51_vm1, %v2657_v48  ;;  %4327 = vmatprep.subr.bf16.mxu1 %v4516_v4 }
0x214b   :  { %4332 = vmatpush3.bf16.msra.mxu0 %v4930_v61  ;;  %4075 = vmatprep.mubr.msk.f32.mxu0 %vm4517_vm0, %v4515_v3 }
0x214c   :  { %4333 = vmatprep.subr.bf16.mxu0 %v4516_v4 }
0x214d   :  { %4329 = vmatpush3.bf16.msra.mxu1 %v4909_v55 }
0x214e   :  { %4336 = vmatprep.subr.bf16.mxu1 %v4516_v4 }
0x214f   :  { %4335 = vmatpush3.bf16.msra.mxu0 %v4940_v7 }
0x2150   :  { %4342 = vmatprep.subr.bf16.mxu0 %v4516_v4 }
0x221b   :  { %v2651_v49 = vpop.f32.mrb[26].mxu1 }
0x221c   :  { %v4044_v51 = vpop.f32.mrb[27].mxu1 }
0x221d   :  { %v2726_v52 = vpop.f32.mrb[30].mxu0 }
0x221e   :  { %v2731_v53 = vrot.slane %v2726_v52, 6  ;;  %v4055_v21 = vpop.f32.mrb[31].mxu0 }
0x2220   :  { %v2733_v56 = vsel %vm147_vm2, %v2651_v49, %v2731_v53 }
0x2221   :  { %v2734_v27 = vadd.f32 %v2733_v56, %v5015_v29 }
0x2223   :  { %4483 = vtanh.f32 %v2734_v27  ;;  %v3583_v58 = vmul.f32 -1.442695, %v2734_v27 }
0x2225   :  { %4485 = vpow2.f32 %v3583_v58 }
0x222d   :  { %v4484_v57 = vpop.eup %4483 }
0x222e   :  { %2744 = vrot.lane.b32.xlu0 %v4484_v57, %s4518_s4 }
0x222f   :  { %v4486_v60 = vpop.eup %4485 }
0x2230   :  { %v2738_v1 = vadd.f32 1.0, %v4486_v60 }
0x2232   :  { %4487 = vrcp.f32 %v2738_v1 }
0x223c   :  { %v4488_v2 = vpop.eup %4487 }
0x223d   :  { %v2742_v63 = vmul.f32 %v4488_v2, %v2569_v44 }
0x22a0   :  { %v2745_v30 = vpop.permute.xlu0 %2744 }
0x22a1   :  { %v2747_v32 = vmul.f32 %v4488_v2, %v2745_v30 }
0x22a3   :  { %2749 = vrot.lane.b32.xlu1 %v2747_v32, %s4519_s19 }
0x2315   :  { %v2750_v8 = vpop.permute.xlu1 %2749 }
0x2316   :  { %v2752_v54 = vadd.f32 %v2750_v8, %v2742_v63 }
0x2318   :  { %4489 = vtanh.f32 %v2752_v54 }
0x2322   :  { %v4490_v43 = vpop.eup %4489 }
0x2323   :  { %2755 = vrot.lane.b32.xlu0 %v4490_v43, %s4518_s4 }
0x2395   :  { %v2756_v29 = vpop.permute.xlu0 %2755 }
0x2396   :  { %v5135_v15 = vmul.f32 %v4488_v2, %v2756_v29 }
0x2398   :  { %2766 = vrot.lane.b32.xlu0 %v5135_v15, %s4519_s19  ;;  %v2840_v59 = vrot.slane %v5135_v15, 2 }
0x239a   :  { %2841 = vrot.lane.b32.xlu1 %v2840_v59, %s4519_s19 }
0x240a   :  { %v2767_v17 = vpop.permute.xlu0 %2766 }
0x240b   :  { %4065 = vmatmul.mubr.msk.f32.vlgmr.msra.gmra.mrb[28].mxu1 %vm51_vm1, %v2767_v17 }
0x240c   :  { %v2842_v19 = vpop.permute.xlu1 %2841  ;;  %4338 = vmatpush3.bf16.msra.mxu1 %v4879_v42  ;;  %4086 = vmatprep.mubr.msk.f32.mxu1 %vm4517_vm0, %v4515_v3 }
0x240d   :  { %4076 = vmatmul.mubr.msk.f32.vlgmr.msra.gmra.mrb[32].mxu0 %vm51_vm1, %v2842_v19  ;;  %4339 = vmatprep.subr.bf16.mxu1 %v4516_v4 }
0x240e   :  { %4344 = vmatpush3.bf16.msra.mxu0 %v4930_v61  ;;  %4097 = vmatprep.mubr.msk.f32.mxu0 %vm4517_vm0, %v4515_v3 }
0x240f   :  { %4345 = vmatprep.subr.bf16.mxu0 %v4516_v4 }
0x2410   :  { %4341 = vmatpush3.bf16.msra.mxu1 %v4909_v55 }
0x2411   :  { %4348 = vmatprep.subr.bf16.mxu1 %v4516_v4 }
0x2412   :  { %4347 = vmatpush3.bf16.msra.mxu0 %v4940_v7 }
0x2413   :  { %4354 = vmatprep.subr.bf16.mxu0 %v4516_v4 }
0x24de   :  { %v2836_v20 = vpop.f32.mrb[28].mxu1 }
0x24df   :  { %v4066_v6 = vpop.f32.mrb[29].mxu1 }
0x24e0   :  { %v2911_v9 = vpop.f32.mrb[32].mxu0 }
0x24e1   :  { %v2916_v24 = vrot.slane %v2911_v9, 6  ;;  %v4077_v16 = vpop.f32.mrb[33].mxu0 }
0x24e3   :  { %v2918_v25 = vsel %vm147_vm2, %v2836_v20, %v2916_v24 }
0x24e4   :  { %v2919_v26 = vadd.f32 %v2918_v25, %v5021_v10  ;;  %v3310_v25 = vrot.slane %v5061_v23, 6  ;;  %v3345_v23 = vld [vmem:[%s5261_s6 + $0x38] sm:$0xff] }
0x24e6   :  { %4491 = vtanh.f32 %v2919_v26  ;;  %v3586_v22 = vmul.f32 -1.442695, %v2919_v26 }
0x24e8   :  { %4493 = vpow2.f32 %v3586_v22  ;;  %v3343_v22 = vld [vmem:[%s5261_s6 + $0x28] sm:$0xff] }
0x24f0   :  { %v4492_v50 = vpop.eup %4491 }
0x24f1   :  { %2929 = vrot.lane.b32.xlu1 %v4492_v50, %s4518_s4  ;;  %v3342_v50 = vld [vmem:[%s5261_s6 + $0x20] sm:$0xff] }
0x24f2   :  { %v4494_v28 = vpop.eup %4493 }
0x24f3   :  { %v2923_v31 = vadd.f32 1.0, %v4494_v28  ;;  %v3344_v28 = vld [vmem:[%s5261_s6 + $0x30] sm:$0xff] }
0x24f5   :  { %4495 = vrcp.f32 %v2923_v31 }
0x24ff   :  { %v4496_v33 = vpop.eup %4495 }
0x2500   :  { %v2927_v35 = vmul.f32 %v4496_v33, %v2752_v54 }
0x2563   :  { %v2930_v0 = vpop.permute.xlu1 %2929 }
0x2564   :  { %v2932_v34 = vmul.f32 %v4496_v33, %v2930_v0  ;;  %v3330_v0 = vrot.slane %v5037_v47, 4 }
0x2566   :  { %2934 = vrot.lane.b32.xlu0 %v2932_v34, %s4519_s19  ;;  %v4364_v34 = vpack.c.bf16 %v3345_v23, %v3344_v28 }
0x25d8   :  { %v2935_v36 = vpop.permute.xlu0 %2934 }
0x25d9   :  { %v2937_v37 = vadd.f32 %v2935_v36, %v2927_v35  ;;  %v3338_v36 = vld [vmem:[%s5261_s6] sm:$0xff] }
0x25db   :  { %4497 = vtanh.f32 %v2937_v37 }
0x25e5   :  { %v4498_v38 = vpop.eup %4497 }
0x25e6   :  { %2940 = vrot.lane.b32.xlu1 %v4498_v38, %s4518_s4 }
0x2658   :  { %v2941_v10 = vpop.permute.xlu1 %2940 }
0x2659   :  { %v5160_v39 = vmul.f32 %v4496_v33, %v2941_v10  ;;  %v4360_v33 = vpack.c.bf16 %v3343_v22, %v3342_v50 }
0x265b   :  { %2948 = vrot.lane.b32.xlu1 %v5160_v39, %s4519_s19  ;;  %v3022_v40 = vrot.slane %v5160_v39, 2  ;;  %v3315_v10 = vrot.slane %v5160_v39, 6  ;;  %v3312_v39 = vrot.slane %v5086_v13, 4 }
0x265d   :  { %3023 = vrot.lane.b32.xlu0 %v3022_v40, %s4519_s19 }
0x26cd   :  { %v2949_v41 = vpop.permute.xlu1 %2948 }
0x26ce   :  { %4087 = vmatmul.mubr.msk.f32.vlgmr.msra.gmra.mrb[30].mxu1 %vm51_vm1, %v2949_v41 }
0x26cf   :  { %v3024_v62 = vpop.permute.xlu0 %3023  ;;  %4350 = vmatpush3.bf16.msra.mxu1 %v4879_v42  ;;  %4108 = vmatprep.mubr.msk.f32.mxu1 %vm4517_vm0, %v4515_v3 }
0x26d0   :  { %4098 = vmatmul.mubr.msk.f32.vlgmr.msra.gmra.mrb[34].mxu0 %vm51_vm1, %v3024_v62  ;;  %4351 = vmatprep.subr.bf16.mxu1 %v4516_v4 }
0x26d1   :  { %4356 = vmatpush3.bf16.msra.mxu0 %v4930_v61  ;;  %4119 = vmatprep.mubr.msk.f32.mxu0 %vm4517_vm0, %v4515_v3 }
0x26d2   :  { %4357 = vmatprep.subr.bf16.mxu0 %v4516_v4 }
0x26d3   :  { %4353 = vmatpush3.bf16.msra.mxu1 %v4909_v55 }
0x26d4   :  { %4361 = vmatprep.subr.bf16.mxu1 %v4360_v33 }
0x26d5   :  { %4359 = vmatpush3.bf16.msra.mxu0 %v4940_v7 }
0x27a1   :  { %v3018_v44 = vpop.f32.mrb[30].mxu1 }
0x27a2   :  { %v4088_v42 = vpop.f32.mrb[31].mxu1 }
0x27a3   :  { %v3093_v45 = vpop.f32.mrb[34].mxu0  ;;  %v3325_v42 = vsel %vm147_vm2, %v5135_v15, %v3315_v10 }
0x27a4   :  { %v3098_v14 = vrot.slane %v3093_v45, 6  ;;  %v4099_v5 = vpop.f32.mrb[35].mxu0 }
0x27a6   :  { %v3100_v46 = vsel %vm147_vm2, %v3018_v44, %v3098_v14 }
0x27a7   :  { %v3101_v48 = vadd.f32 %v3100_v46, %v5024_v11  ;;  %v3328_v46 = vrot.slane %v5135_v15, 4  ;;  %v3340_v15 = vld [vmem:[%s5261_s6 + $0x10] sm:$0xff] }
0x27a9   :  { %4499 = vtanh.f32 %v3101_v48  ;;  %v3589_v3 = vmul.f32 -1.442695, %v3101_v48 }
0x27ab   :  { %4501 = vpow2.f32 %v3589_v3  ;;  %v3322_v3 = vsel %vm147_vm2, %v5037_v47, %v3310_v25 }
0x27b3   :  { %v4500_v61 = vpop.eup %4499 }
0x27b4   :  { %3111 = vrot.lane.b32.xlu0 %v4500_v61, %s4518_s4 }
0x27b5   :  { %v4502_v4 = vpop.eup %4501 }
0x27b6   :  { %v3105_v49 = vadd.f32 1.0, %v4502_v4  ;;  %v3323_v4 = vsel %vm1619_vm3, %v3322_v3, %v3312_v39 }
0x27b8   :  { %4503 = vrcp.f32 %v3105_v49  ;;  %v3324_v49 = vsel %vm1621_vm4, %v3323_v4, %v5111_v18 }
0x27c2   :  { %v4504_v55 = vpop.eup %4503 }
0x27c3   :  { %v3109_v52 = vmul.f32 %v4504_v55, %v2937_v37  ;;  %v3339_v37 = vld [vmem:[%s5261_s6 + $0x8] sm:$0xff] }
0x27c4   :  { %v4368_v38 = vpack.c.bf16 %v3339_v37, %v3338_v36 }
0x2826   :  { %v3112_v7 = vpop.permute.xlu0 %3111 }
0x2827   :  { %v3114_v51 = vmul.f32 %v4504_v55, %v3112_v7 }
0x2829   :  { %3116 = vrot.lane.b32.xlu1 %v3114_v51, %s4519_s19 }
0x289b   :  { %v3117_v53 = vpop.permute.xlu1 %3116 }
0x289c   :  { %v3119_v21 = vadd.f32 %v3117_v53, %v3109_v52  ;;  %v3597_v52 = vld [vmem:[%s5262_s7] ss:$0 sm:$0xff] }
0x289e   :  { %4505 = vtanh.f32 %v3119_v21 }
0x28a8   :  { %v4506_v56 = vpop.eup %4505 }
0x28a9   :  { %3122 = vrot.lane.b32.xlu0 %v4506_v56, %s4518_s4 }
0x291b   :  { %v3123_v11 = vpop.permute.xlu0 %3122 }
0x291c   :  { %v3125_v27 = vmul.f32 %v4504_v55, %v3123_v11 }
0x291e   :  { %3132 = vrot.lane.b32.xlu0 %v3125_v27, %s4519_s19  ;;  %v3206_v57 = vrot.slane %v3125_v27, 2  ;;  %v3317_v41 = vrot.slane %v3125_v27, 4 }
0x2920   :  { %3207 = vrot.lane.b32.xlu1 %v3206_v57, %s4519_s19  ;;  %v3326_v45 = vsel %vm1619_vm3, %v3325_v42, %v3317_v41 }
0x2990   :  { %v3133_v58 = vpop.permute.xlu0 %3132 }
0x2991   :  { %4109 = vmatmul.mubr.msk.f32.vlgmr.msra.gmra.mrb[32].mxu1 %vm51_vm1, %v3133_v58 }
0x2992   :  { %v3208_v60 = vpop.permute.xlu1 %3207  ;;  %4363 = vmatpush3.bf16.msra.mxu1 %v4360_v33 }
0x2993   :  { %4120 = vmatmul.mubr.msk.f32.vlgmr.msra.gmra.mrb[36].mxu0 %vm51_vm1, %v3208_v60  ;;  %4365 = vmatprep.subr.bf16.mxu1 %v4364_v34 }
0x2996   :  { %4367 = vmatpush3.bf16.msra.mxu1 %v4364_v34 }
0x2997   :  { %4369 = vmatprep.subr.bf16.mxu1 %v4368_v38 }
0x2a64   :  { %v3202_v1 = vpop.f32.mrb[32].mxu1 }
0x2a65   :  { %v4110_v2 = vpop.f32.mrb[33].mxu1 }
0x2a66   :  { %v3277_v30 = vpop.f32.mrb[36].mxu0 }
0x2a67   :  { %v3282_v32 = vrot.slane %v3277_v30, 6  ;;  %v4121_v63 = vpop.f32.mrb[37].mxu0 }
0x2a69   :  { %v3284_v8 = vsel %vm147_vm2, %v3202_v1, %v3282_v32 }
0x2a6a   :  { %v3285_v54 = vadd.f32 %v3284_v8, %v5027_v12  ;;  %v3335_v12 = vsel %vm147_vm2, %v5111_v18, %v5086_v13  ;;  %v3341_v13 = vld [vmem:[%s5261_s6 + $0x18] sm:$0xff] }
0x2a6b   :  { %v3336_v31 = vsel %vm1619_vm3, %v3335_v12, %v3310_v25  ;;  %v4372_v7 = vpack.c.bf16 %v3341_v13, %v3340_v15 }
0x2a6c   :  { %4507 = vtanh.f32 %v3285_v54  ;;  %v3592_v29 = vmul.f32 -1.442695, %v3285_v54  ;;  %v3337_v35 = vsel %vm1621_vm4, %v3336_v31, %v3330_v0 }
0x2a6e   :  { %4509 = vpow2.f32 %v3592_v29 }
0x2a76   :  { %v4508_v43 = vpop.eup %4507 }
0x2a77   :  { %3295 = vrot.lane.b32.xlu1 %v4508_v43, %s4518_s4 }
0x2a78   :  { %v4510_v59 = vpop.eup %4509 }
0x2a79   :  { %v3289_v17 = vadd.f32 1.0, %v4510_v59 }
0x2a7b   :  { %4511 = vrcp.f32 %v3289_v17 }
0x2a85   :  { %v4512_v19 = vpop.eup %4511 }
0x2a86   :  { %v3293_v9 = vmul.f32 %v4512_v19, %v3119_v21 }
0x2ae9   :  { %v3296_v20 = vpop.permute.xlu1 %3295 }
0x2aea   :  { %v3298_v6 = vmul.f32 %v4512_v19, %v3296_v20 }
0x2aec   :  { %3300 = vrot.lane.b32.xlu0 %v3298_v6, %s4519_s19 }
0x2b5e   :  { %v3301_v24 = vpop.permute.xlu0 %3300 }
0x2b5f   :  { %v3303_v16 = vadd.f32 %v3301_v24, %v3293_v9 }
0x2b61   :  { %4513 = vtanh.f32 %v3303_v16 }
0x2b6b   :  { %v4514_v26 = vpop.eup %4513 }
0x2b6c   :  { %3306 = vrot.lane.b32.xlu1 %v4514_v26, %s4518_s4 }
0x2b70   :  { %3350 = vrot.lane.b32.xlu1 %v3337_v35, %s4519_s19 }
0x2bde   :  { %v3307_v40 = vpop.permute.xlu1 %3306 }
0x2bdf   :  { %v3309_v62 = vmul.f32 %v4512_v19, %v3307_v40 }
0x2be1   :  { %v3320_v44 = vrot.slane %v3309_v62, 2 }
0x2be2   :  { %v3351_v51 = vpop.permute.xlu1 %3350 }
0x2be3   :  { %v3332_v14 = vsel %vm147_vm2, %v3320_v44, %v3125_v27  ;;  %v3327_v5 = vsel %vm1621_vm4, %v3326_v45, %v3320_v44 }
0x2be4   :  { %3435 = vrot.lane.b32.xlu1 %v3327_v5, %s4519_s19  ;;  %v3333_v48 = vsel %vm1619_vm3, %v3332_v14, %v3315_v10 }
0x2be5   :  { %v3334_v61 = vsel %vm1621_vm4, %v3333_v48, %v3328_v46 }
0x2be6   :  { %3348 = vrot.lane.b32.xlu0 %v3334_v61, %s4519_s19 }
0x2bea   :  { %3433 = vrot.lane.b32.xlu0 %v3324_v49, %s4519_s19 }
0x2c56   :  { %v3436_v18 = vpop.permute.xlu1 %3435 }
0x2c58   :  { %v3349_v55 = vpop.permute.xlu0 %3348 }
0x2c59   :  { %4130 = vmatprep.mubr.msk.f32.mxu1 %vm51_vm1, %v3349_v55 }
0x2c5a   :  { %4131 = vmatmul.mubr.msk.f32.vlgmr.msra.gmra.mrb[34].mxu1 %vm51_vm1, %v3351_v51 }
0x2c5b   :  { %4371 = vmatpush3.bf16.msra.mxu1 %v4368_v38 }
0x2c5c   :  { %v3434_v47 = vpop.permute.xlu0 %3433  ;;  %4373 = vmatprep.subr.bf16.mxu1 %v4372_v7 }
0x2c5d   :  { %4141 = vmatprep.mubr.msk.f32.mxu1 %vm51_vm1, %v3434_v47 }
0x2c5f   :  { %4375 = vmatpush3.bf16.msra.mxu1 %v4372_v7 }
0x2c62   :  { %4142 = vmatmul.mubr.msk.f32.vlgmr.msra.gmra.mrb[34].mxu1 %vm51_vm1, %v3436_v18 }
0x2d35   :  { %v4143_v53 = vpop.f32.mrb[34].mxu1 }
0x2d36   :  { %v3524_v21 = vadd.f32 %v4143_v53, %v3597_v52  ;;  %v3507_v56 = vpop.f32.mrb[35].mxu1 }
0x2d37   :  { %v3523_v11 = vadd.f32 %v3597_v52, %v3507_v56 }
0x2d38   :  { %3526 = vst [vmem:[%s5263_s8 + $0x8] sm:$0xff] %v3524_v21 }
0x2d39   :  { %3525 = vst [vmem:[%s5263_s8] sm:$0xff] %v3523_v11 }

</bundles_post_ra>
